<compile_context>
chip_gen: v7x
topology: tpu7x:2x2x1
jax: 0.10.0
libtpu: 0.0.40
codegen_flags: <defaults>
</compile_context>

<pallas_src>
import math

import jax
import jax.numpy as jnp
from jax.experimental import pallas as pl
from jax.experimental.pallas import tpu as pltpu

# ----------------------------- configuration -------------------------------
B        = 2          # batch
SEQ_LEN  = 16         # configs.seq_len (pred_len == seq_len in PAttn)
ENC_IN   = 4          # configs.enc_in (C)
C_OUT    = 4          # configs.c_out
PATCH    = 4          # configs.patch_len
STRIDE   = 4          # configs.stride
D_MODEL  = 32         # configs.d_model
N_HEADS  = 4          # configs.n_heads
D_FF     = 64         # configs.d_ff
PRED_LEN  = SEQ_LEN
PATCH_NUM = (SEQ_LEN - PATCH) // STRIDE + 2   # ReplicationPad1d((0, stride)) + unfold
HEAD_DIM  = D_MODEL // N_HEADS
BC        = B * ENC_IN                        # number of channel-series
TOKENS    = BC * PATCH_NUM                    # all patches of all series (patch-major)
EPS_LN    = 1e-5


# ------------------------------ small helpers ------------------------------
def _layernorm(x, g, b, eps=EPS_LN):
    mu = jnp.mean(x, axis=-1, keepdims=True)
    xc = x - mu
    var = jnp.mean(xc * xc, axis=-1, keepdims=True)
    return xc * jax.lax.rsqrt(var + eps) * g + b


def _full(shape):
    n = len(shape)
    return pl.BlockSpec(tuple(shape), lambda *_, n=n: (0,) * n)


# ------------------------------ fused kernel --------------------------------
def pattn_kernel(p_ref, sm_ref, in_w, vec_ref, wqkv, bqkv, wo, w1, b1, w2,
                 w_out, out_b, pblk, pbias, o_ref):
    f32 = jnp.float32
    in_b, bo, b2 = vec_ref[0], vec_ref[1], vec_ref[2]
    ln1g, ln1b = vec_ref[3], vec_ref[4]
    ln2g, ln2b = vec_ref[5], vec_ref[6]
    lnfg, lnfb = vec_ref[7], vec_ref[8]

    # in_layer: patch embedding for all B*C*M tokens at once: (T, P) @ (P, D)
    enc = jnp.dot(p_ref[...], in_w[...], preferred_element_type=f32) + in_b

    # fused QKV projection: single lane-dense (T, D) @ (D, 3D) push
    qkv = jnp.dot(enc, wqkv[...], preferred_element_type=f32) + bqkv[...]

    # same-series attention mask, generated in-kernel (tokens are patch-major:
    # series(t) = t % BC), so attention stays block-diagonal per series.
    ti = jax.lax.broadcasted_iota(jnp.int32, (TOKENS, TOKENS), 0)
    tj = jax.lax.broadcasted_iota(jnp.int32, (TOKENS, TOKENS), 1)
    maskf = ((ti % BC) == (tj % BC)).astype(f32)

    scale = 1.0 / math.sqrt(HEAD_DIM)
    dn_t = (((1,), (1,)), ((), ()))                       # q @ k^T (contract last dims)
    ctx_heads = []
    for h in range(N_HEADS):
        q_h = qkv[:, h * HEAD_DIM:(h + 1) * HEAD_DIM]
        k_h = qkv[:, D_MODEL + h * HEAD_DIM:D_MODEL + (h + 1) * HEAD_DIM]
        v_h = qkv[:, 2 * D_MODEL + h * HEAD_DIM:2 * D_MODEL + (h + 1) * HEAD_DIM]
        s = jax.lax.dot_general(q_h, k_h, dn_t, preferred_element_type=f32) * scale
        # no row-max subtraction needed: f32 scores are O(1); masked terms are exactly 0
        e = jnp.exp(s) * maskf
        probs = e * pl.reciprocal(jnp.sum(e, axis=-1, keepdims=True), approx=True)
        ctx_heads.append(jnp.dot(probs, v_h, preferred_element_type=f32))
    ctx = jnp.concatenate(ctx_heads, axis=-1)             # (T, D)
    attn = jnp.dot(ctx, wo[...], preferred_element_type=f32) + bo   # MXU accumulates over heads

    # ---- EncoderLayer (residual+LN, 1x1-conv FFN with gelu) + final LN -----
    # TODO(synk): PyTorch F.gelu default is the exact erf form; tanh approximation used here.
    x1 = _layernorm(enc + attn, ln1g, ln1b)
    y = jax.nn.gelu(jnp.dot(x1, w1[...], preferred_element_type=f32) + b1[...],
                    approximate=True)
    y = jnp.dot(y, w2[...], preferred_element_type=f32) + b2
    x2 = _layernorm(x1 + y, ln2g, ln2b)
    x3 = _layernorm(x2, lnfg, lnfb)                       # (T, D), patch-major rows

    # ---- out_layer: per-series (m d)-flatten @ out_W as 5 sublane-aligned ----
    # accumulating (BC, D)@(D, L) matmuls (tokens for patch m are rows m*BC..).
    dec = jnp.dot(x3[0:BC, :], w_out[0:D_MODEL, :], preferred_element_type=f32)
    for m in range(1, PATCH_NUM):
        dec = dec + jnp.dot(x3[m * BC:(m + 1) * BC, :],
                            w_out[m * D_MODEL:(m + 1) * D_MODEL, :],
                            preferred_element_type=f32)
    dec = dec + out_b[...]                                # (BC, L)

    # ---- de-normalize + OutputBlock projection, single lane-dense store ----
    # TODO(synk): OutputBlock's task head is assumed to be a per-timestep
    #             Linear(enc_in -> c_out) (dropout identity in eval).
    std = sm_ref[:, 0:1]
    mean = sm_ref[:, 1:2]
    y_dn = dec * std + mean                               # (BC, L)
    o_ref[...] = (jnp.dot(pblk[...], y_dn, preferred_element_type=f32)
                  + pbias[...])                           # (B*C_OUT, L)


# --------------------------- parameter (re)packing ---------------------------
def pack_params(p):
    """Re-arrange PyTorch-layout weights into the kernel-friendly packing (done once)."""
    wqkv = jnp.concatenate([p["Wq"], p["Wk"], p["Wv"]], axis=1)          # (D, 3D)
    bqkv = jnp.concatenate([p["bq"], p["bk"], p["bv"]], axis=1)          # (1, 3D)
    vecs = jnp.stack([p["in_b"], p["bo"], p["b2"], p["ln1_g"], p["ln1_b"],
                      p["ln2_g"], p["ln2_b"], p["lnf_g"], p["lnf_b"]])   # (9, 1, D)
    # block-diagonal OutputBlock projection: (B*C_OUT, B*ENC_IN)
    pblk = jnp.kron(jnp.eye(B, dtype=jnp.float32), p["proj_W"].T)
    pbias = jnp.tile(p["proj_b"].reshape(C_OUT, 1), (B, 1))              # (B*C_OUT, 1)
    return dict(in_W=p["in_W"], vecs=vecs, Wqkv=wqkv, bqkv=bqkv, Wo=p["Wo"],
                W1=p["W1"], b1=p["b1"], W2=p["W2"],
                W_out=p["out_W"], out_b=p["out_b"],
                proj_blk=pblk, proj_bias=pbias)


# ------------------------------ forward wrapper ------------------------------
@jax.jit
def pattn_forward(x_enc, packed):
    """Full PAttn forward. x_enc: (B, seq_len, enc_in) float32 -> (B, pred_len, c_out)."""
    # instance normalization (non-stationary trick)
    means = jnp.mean(x_enc, axis=1, keepdims=True)
    xc = x_enc - means
    stdev = jnp.sqrt(jnp.mean(xc * xc, axis=1, keepdims=True) + 1e-5)
    xn = xc / stdev

    # (B, C, L) -> ReplicationPad1d((0, stride)) -> unfold(patch, stride)
    x = jnp.transpose(xn, (0, 2, 1))
    x = jnp.concatenate([x, jnp.repeat(x[..., -1:], STRIDE, axis=-1)], axis=-1)
    idx = jnp.arange(PATCH_NUM)[:, None] * STRIDE + jnp.arange(PATCH)[None, :]
    patches = x[..., idx]                                               # (B, C, M, P)
    # patch-major token order: t = m*BC + (b*C + c)
    patches = jnp.transpose(patches, (2, 0, 1, 3)).reshape(TOKENS, PATCH)
    std_c = jnp.transpose(stdev, (0, 2, 1)).reshape(BC, 1)
    mean_c = jnp.transpose(means, (0, 2, 1)).reshape(BC, 1)
    stdmean = jnp.concatenate([std_c, mean_c], axis=1)                  # (BC, 2)

    args = (patches, stdmean, packed["in_W"], packed["vecs"], packed["Wqkv"],
            packed["bqkv"], packed["Wo"], packed["W1"], packed["b1"], packed["W2"],
            packed["W_out"], packed["out_b"], packed["proj_blk"], packed["proj_bias"])

    out_flat = pl.pallas_call(
        pattn_kernel,
        out_shape=jax.ShapeDtypeStruct((B * C_OUT, PRED_LEN), jnp.float32),
        grid=(1,),
        in_specs=[_full(a.shape) for a in args],
        out_specs=_full((B * C_OUT, PRED_LEN)),
        compiler_params=pltpu.CompilerParams(dimension_semantics=("arbitrary",)),
    )(*args)
    out = out_flat.reshape(B, C_OUT, PRED_LEN)
    return jnp.transpose(out, (0, 2, 1))                                # (B, L, c_out)


# --------------------------- parameter construction -------------------------
def init_params(key):
    ks = jax.random.split(key, 12)
    w = lambda k, s: (0.05 * jax.random.normal(k, s)).astype(jnp.float32)
    z = lambda s: jnp.zeros(s, jnp.float32)
    o = lambda s: jnp.ones(s, jnp.float32)
    return dict(
        in_W=w(ks[0], (PATCH, D_MODEL)),            in_b=z((1, D_MODEL)),
        Wq=w(ks[1], (D_MODEL, D_MODEL)),            bq=z((1, D_MODEL)),
        Wk=w(ks[2], (D_MODEL, D_MODEL)),            bk=z((1, D_MODEL)),
        Wv=w(ks[3], (D_MODEL, D_MODEL)),            bv=z((1, D_MODEL)),
        Wo=w(ks[4], (D_MODEL, D_MODEL)),            bo=z((1, D_MODEL)),
        ln1_g=o((1, D_MODEL)),                      ln1_b=z((1, D_MODEL)),
        W1=w(ks[5], (D_MODEL, D_FF)),               b1=z((1, D_FF)),
        W2=w(ks[6], (D_FF, D_MODEL)),               b2=z((1, D_MODEL)),
        ln2_g=o((1, D_MODEL)),                      ln2_b=z((1, D_MODEL)),
        lnf_g=o((1, D_MODEL)),                      lnf_b=z((1, D_MODEL)),
        out_W=w(ks[7], (PATCH_NUM * D_MODEL, PRED_LEN)), out_b=z((1, PRED_LEN)),
        proj_W=w(ks[8], (ENC_IN, C_OUT)),           proj_b=z((1, C_OUT)),
    )


# ------------------------------ pure-JAX reference --------------------------
def reference_forward(x_enc, p):
    b, l, c = x_enc.shape
    means = jnp.mean(x_enc, 1, keepdims=True)
    xc = x_enc - means
    stdev = jnp.sqrt(jnp.mean(xc * xc, 1, keepdims=True) + 1e-5)
    xn = xc / stdev
    x = jnp.transpose(xn, (0, 2, 1))
    x = jnp.concatenate([x, jnp.repeat(x[..., -1:], STRIDE, -1)], -1)
    idx = jnp.arange(PATCH_NUM)[:, None] * STRIDE + jnp.arange(PATCH)[None, :]
    patches = x[..., idx]                                            # (B,C,M,P)
    enc = (patches @ p["in_W"] + p["in_b"]).reshape(b * c, PATCH_NUM, D_MODEL)
    bc = b * c
    q = (enc @ p["Wq"] + p["bq"]).reshape(bc, PATCH_NUM, N_HEADS, HEAD_DIM)
    k = (enc @ p["Wk"] + p["bk"]).reshape(bc, PATCH_NUM, N_HEADS, HEAD_DIM)
    v = (enc @ p["Wv"] + p["bv"]).reshape(bc, PATCH_NUM, N_HEADS, HEAD_DIM)
    s = jnp.einsum("bmhe,bnhe->bhmn", q, k) / math.sqrt(HEAD_DIM)
    s = s - jnp.max(s, -1, keepdims=True)
    a = jnp.exp(s)
    a = a / jnp.sum(a, -1, keepdims=True)
    attn = jnp.einsum("bhmn,bnhd->bmhd", a, v).reshape(bc, PATCH_NUM, D_MODEL)
    attn = attn @ p["Wo"] + p["bo"]
    x1 = _layernorm(enc + attn, p["ln1_g"], p["ln1_b"])
    y = jax.nn.gelu(x1 @ p["W1"] + p["b1"], approximate=True)
    y = y @ p["W2"] + p["b2"]
    x2 = _layernorm(x1 + y, p["ln2_g"], p["ln2_b"])
    x3 = _layernorm(x2, p["lnf_g"], p["lnf_b"])
    flat = x3.reshape(b, c, PATCH_NUM * D_MODEL)
    dec = flat @ p["out_W"] + p["out_b"]                             # (B,C,L)
    dec = jnp.transpose(dec, (0, 2, 1))
    dec = dec * stdev + means
    return dec @ p["proj_W"] + p["proj_b"]


# ------------------------------------ main -----------------------------------
if __name__ == "__main__":
    key = jax.random.PRNGKey(0)
    kx, kp = jax.random.split(key)
    x_enc = jax.random.normal(kx, (B, SEQ_LEN, ENC_IN), jnp.float32)
    params = init_params(kp)
    packed = pack_params(params)

    out = jax.block_until_ready(pattn_forward(x_enc, packed))
    assert out.shape == (B, PRED_LEN, C_OUT), out.shape

    ref = reference_forward(x_enc, params)
    err = float(jnp.max(jnp.abs(out - ref)))
    if not bool(jnp.allclose(out, ref, atol=2e-2, rtol=2e-2)):
        raise SystemExit(f"mismatch: max err {err}")

    print("KERNEL_OK")
</pallas_src>

<mosaic_0001>
module attributes {stable_mosaic.version = 11 : i64} {
  func.func @pattn_kernel(%arg0: i32, %arg1: memref<40x4xf32, #tpu.memory_space<vmem>>, %arg2: memref<8x2xf32, #tpu.memory_space<vmem>>, %arg3: memref<4x32xf32, #tpu.memory_space<vmem>>, %arg4: memref<9x1x32xf32, #tpu.memory_space<vmem>>, %arg5: memref<32x96xf32, #tpu.memory_space<vmem>>, %arg6: memref<1x96xf32, #tpu.memory_space<vmem>>, %arg7: memref<32x32xf32, #tpu.memory_space<vmem>>, %arg8: memref<32x64xf32, #tpu.memory_space<vmem>>, %arg9: memref<1x64xf32, #tpu.memory_space<vmem>>, %arg10: memref<64x32xf32, #tpu.memory_space<vmem>>, %arg11: memref<160x16xf32, #tpu.memory_space<vmem>>, %arg12: memref<1x16xf32, #tpu.memory_space<vmem>>, %arg13: memref<8x8xf32, #tpu.memory_space<vmem>>, %arg14: memref<8x1xf32, #tpu.memory_space<vmem>>, %arg15: memref<8x16xf32, #tpu.memory_space<vmem>>) attributes {dimension_semantics = [#tpu.dimension_semantics<arbitrary>], iteration_bounds = array<i64: 1>, scalar_prefetch = 0 : i64, scratch_operands = 0 : i64, tpu.core_type = #tpu.core_type<tc>, window_params = [{pipeline_mode = #tpu.pipeline_mode<synchronous>, transform_indices = @transform_0, window_bounds = array<i64: 40, 4>}, {pipeline_mode = #tpu.pipeline_mode<synchronous>, transform_indices = @transform_1, window_bounds = array<i64: 8, 2>}, {pipeline_mode = #tpu.pipeline_mode<synchronous>, transform_indices = @transform_2, window_bounds = array<i64: 4, 32>}, {pipeline_mode = #tpu.pipeline_mode<synchronous>, transform_indices = @transform_3, window_bounds = array<i64: 9, 1, 32>}, {pipeline_mode = #tpu.pipeline_mode<synchronous>, transform_indices = @transform_4, window_bounds = array<i64: 32, 96>}, {pipeline_mode = #tpu.pipeline_mode<synchronous>, transform_indices = @transform_5, window_bounds = array<i64: 1, 96>}, {pipeline_mode = #tpu.pipeline_mode<synchronous>, transform_indices = @transform_6, window_bounds = array<i64: 32, 32>}, {pipeline_mode = #tpu.pipeline_mode<synchronous>, transform_indices = @transform_7, window_bounds = array<i64: 32, 64>}, {pipeline_mode = #tpu.pipeline_mode<synchronous>, transform_indices = @transform_8, window_bounds = array<i64: 1, 64>}, {pipeline_mode = #tpu.pipeline_mode<synchronous>, transform_indices = @transform_9, window_bounds = array<i64: 64, 32>}, {pipeline_mode = #tpu.pipeline_mode<synchronous>, transform_indices = @transform_10, window_bounds = array<i64: 160, 16>}, {pipeline_mode = #tpu.pipeline_mode<synchronous>, transform_indices = @transform_11, window_bounds = array<i64: 1, 16>}, {pipeline_mode = #tpu.pipeline_mode<synchronous>, transform_indices = @transform_12, window_bounds = array<i64: 8, 8>}, {pipeline_mode = #tpu.pipeline_mode<synchronous>, transform_indices = @transform_13, window_bounds = array<i64: 8, 1>}, {pipeline_mode = #tpu.pipeline_mode<synchronous>, transform_indices = @transform_14, window_bounds = array<i64: 8, 16>}]} {
    %c0 = arith.constant 0 : index
    %c0_0 = arith.constant 0 : index
    %c0_1 = arith.constant 0 : index
    %0 = vector.load %arg4[%c0, %c0_0, %c0_1] : memref<9x1x32xf32, #tpu.memory_space<vmem>>, vector<1x1x32xf32>
    %1 = vector.shape_cast %0 : vector<1x1x32xf32> to vector<1x32xf32>
    %c1 = arith.constant 1 : index
    %c0_2 = arith.constant 0 : index
    %c0_3 = arith.constant 0 : index
    %2 = vector.load %arg4[%c1, %c0_2, %c0_3] : memref<9x1x32xf32, #tpu.memory_space<vmem>>, vector<1x1x32xf32>
    %3 = vector.shape_cast %2 : vector<1x1x32xf32> to vector<1x32xf32>
    %c2 = arith.constant 2 : index
    %c0_4 = arith.constant 0 : index
    %c0_5 = arith.constant 0 : index
    %4 = vector.load %arg4[%c2, %c0_4, %c0_5] : memref<9x1x32xf32, #tpu.memory_space<vmem>>, vector<1x1x32xf32>
    %5 = vector.shape_cast %4 : vector<1x1x32xf32> to vector<1x32xf32>
    %c3 = arith.constant 3 : index
    %c0_6 = arith.constant 0 : index
    %c0_7 = arith.constant 0 : index
    %6 = vector.load %arg4[%c3, %c0_6, %c0_7] : memref<9x1x32xf32, #tpu.memory_space<vmem>>, vector<1x1x32xf32>
    %7 = vector.shape_cast %6 : vector<1x1x32xf32> to vector<1x32xf32>
    %c4 = arith.constant 4 : index
    %c0_8 = arith.constant 0 : index
    %c0_9 = arith.constant 0 : index
    %8 = vector.load %arg4[%c4, %c0_8, %c0_9] : memref<9x1x32xf32, #tpu.memory_space<vmem>>, vector<1x1x32xf32>
    %9 = vector.shape_cast %8 : vector<1x1x32xf32> to vector<1x32xf32>
    %c5 = arith.constant 5 : index
    %c0_10 = arith.constant 0 : index
    %c0_11 = arith.constant 0 : index
    %10 = vector.load %arg4[%c5, %c0_10, %c0_11] : memref<9x1x32xf32, #tpu.memory_space<vmem>>, vector<1x1x32xf32>
    %11 = vector.shape_cast %10 : vector<1x1x32xf32> to vector<1x32xf32>
    %c6 = arith.constant 6 : index
    %c0_12 = arith.constant 0 : index
    %c0_13 = arith.constant 0 : index
    %12 = vector.load %arg4[%c6, %c0_12, %c0_13] : memref<9x1x32xf32, #tpu.memory_space<vmem>>, vector<1x1x32xf32>
    %13 = vector.shape_cast %12 : vector<1x1x32xf32> to vector<1x32xf32>
    %c7 = arith.constant 7 : index
    %c0_14 = arith.constant 0 : index
    %c0_15 = arith.constant 0 : index
    %14 = vector.load %arg4[%c7, %c0_14, %c0_15] : memref<9x1x32xf32, #tpu.memory_space<vmem>>, vector<1x1x32xf32>
    %15 = vector.shape_cast %14 : vector<1x1x32xf32> to vector<1x32xf32>
    %c8 = arith.constant 8 : index
    %c0_16 = arith.constant 0 : index
    %c0_17 = arith.constant 0 : index
    %16 = vector.load %arg4[%c8, %c0_16, %c0_17] : memref<9x1x32xf32, #tpu.memory_space<vmem>>, vector<1x1x32xf32>
    %17 = vector.shape_cast %16 : vector<1x1x32xf32> to vector<1x32xf32>
    %c0_18 = arith.constant 0 : index
    %c0_19 = arith.constant 0 : index
    %18 = vector.load %arg1[%c0_18, %c0_19] : memref<40x4xf32, #tpu.memory_space<vmem>>, vector<40x4xf32>
    %c0_20 = arith.constant 0 : index
    %c0_21 = arith.constant 0 : index
    %19 = vector.load %arg3[%c0_20, %c0_21] : memref<4x32xf32, #tpu.memory_space<vmem>>, vector<4x32xf32>
    %cst = arith.constant dense<0.000000e+00> : vector<40x32xf32>
    %20 = tpu.matmul %18, %19, %cst {dimension_numbers = #tpu.dot_dimension_numbers<[1], [0], [0], [1], [0, 0, 1, 1], [], []>} : vector<40x4xf32>, vector<4x32xf32>, vector<40x32xf32> -> vector<40x32xf32>
    %21 = vector.broadcast %1 : vector<1x32xf32> to vector<40x32xf32>
    %22 = arith.addf %20, %21 : vector<40x32xf32>
    %c0_22 = arith.constant 0 : index
    %c0_23 = arith.constant 0 : index
    %23 = vector.load %arg5[%c0_22, %c0_23] : memref<32x96xf32, #tpu.memory_space<vmem>>, vector<32x96xf32>
    %cst_24 = arith.constant dense<0.000000e+00> : vector<40x96xf32>
    %24 = tpu.matmul %22, %23, %cst_24 {dimension_numbers = #tpu.dot_dimension_numbers<[1], [0], [0], [1], [0, 0, 1, 1], [], []>} : vector<40x32xf32>, vector<32x96xf32>, vector<40x96xf32> -> vector<40x96xf32>
    %c0_25 = arith.constant 0 : index
    %c0_26 = arith.constant 0 : index
    %25 = vector.load %arg6[%c0_25, %c0_26] : memref<1x96xf32, #tpu.memory_space<vmem>>, vector<1x96xf32>
    %26 = vector.broadcast %25 : vector<1x96xf32> to vector<40x96xf32>
    %27 = arith.addf %24, %26 : vector<40x96xf32>
    %28 = tpu.iota {dimensions = array<i32: 0>} : vector<40x40xi32>
    %29 = tpu.iota {dimensions = array<i32: 1>} : vector<40x40xi32>
    %c8_i32 = arith.constant 8 : i32
    %c0_i32 = arith.constant 0 : i32
    %30 = arith.cmpi eq, %c8_i32, %c0_i32 : i32
    %c1_i32 = arith.constant 1 : i32
    %31 = arith.select %30, %c1_i32, %c8_i32 : i32
    %32 = vector.broadcast %31 : i32 to vector<40x40xi32>
    %33 = arith.remsi %28, %32 : vector<40x40xi32>
    %c0_i32_27 = arith.constant 0 : i32
    %34 = vector.broadcast %c0_i32_27 : i32 to vector<40x40xi32>
    %35 = arith.cmpi ne, %33, %34 : vector<40x40xi32>
    %c0_i32_28 = arith.constant 0 : i32
    %36 = vector.broadcast %c0_i32_28 : i32 to vector<40x40xi32>
    %37 = arith.cmpi slt, %33, %36 : vector<40x40xi32>
    %c0_i32_29 = arith.constant 0 : i32
    %38 = arith.cmpi slt, %31, %c0_i32_29 : i32
    %39 = vector.broadcast %38 : i1 to vector<40x40xi1>
    %40 = vector.broadcast %39 : vector<40x40xi1> to vector<40x40xi1>
    %41 = arith.xori %37, %40 : vector<40x40xi1>
    %42 = arith.andi %41, %35 : vector<40x40xi1>
    %43 = vector.broadcast %31 : i32 to vector<40x40xi32>
    %44 = arith.addi %33, %43 : vector<40x40xi32>
    %45 = arith.select %42, %44, %33 : vector<40x40xi1>, vector<40x40xi32>
    %c8_i32_30 = arith.constant 8 : i32
    %c0_i32_31 = arith.constant 0 : i32
    %46 = arith.cmpi eq, %c8_i32_30, %c0_i32_31 : i32
    %c1_i32_32 = arith.constant 1 : i32
    %47 = arith.select %46, %c1_i32_32, %c8_i32_30 : i32
    %48 = vector.broadcast %47 : i32 to vector<40x40xi32>
    %49 = arith.remsi %29, %48 : vector<40x40xi32>
    %c0_i32_33 = arith.constant 0 : i32
    %50 = vector.broadcast %c0_i32_33 : i32 to vector<40x40xi32>
    %51 = arith.cmpi ne, %49, %50 : vector<40x40xi32>
    %c0_i32_34 = arith.constant 0 : i32
    %52 = vector.broadcast %c0_i32_34 : i32 to vector<40x40xi32>
    %53 = arith.cmpi slt, %49, %52 : vector<40x40xi32>
    %c0_i32_35 = arith.constant 0 : i32
    %54 = arith.cmpi slt, %47, %c0_i32_35 : i32
    %55 = vector.broadcast %54 : i1 to vector<40x40xi1>
    %56 = vector.broadcast %55 : vector<40x40xi1> to vector<40x40xi1>
    %57 = arith.xori %53, %56 : vector<40x40xi1>
    %58 = arith.andi %57, %51 : vector<40x40xi1>
    %59 = vector.broadcast %47 : i32 to vector<40x40xi32>
    %60 = arith.addi %49, %59 : vector<40x40xi32>
    %61 = arith.select %58, %60, %49 : vector<40x40xi1>, vector<40x40xi32>
    %62 = arith.cmpi eq, %45, %61 : vector<40x40xi32>
    %63 = arith.extui %62 : vector<40x40xi1> to vector<40x40xi32>
    %64 = arith.sitofp %63 : vector<40x40xi32> to vector<40x40xf32>
    %65 = vector.extract_strided_slice %27 {offsets = [0, 0], sizes = [40, 8], strides = [1, 1]} : vector<40x96xf32> to vector<40x8xf32>
    %66 = vector.extract_strided_slice %27 {offsets = [0, 32], sizes = [40, 8], strides = [1, 1]} : vector<40x96xf32> to vector<40x8xf32>
    %67 = vector.extract_strided_slice %27 {offsets = [0, 64], sizes = [40, 8], strides = [1, 1]} : vector<40x96xf32> to vector<40x8xf32>
    %cst_36 = arith.constant dense<0.000000e+00> : vector<40x40xf32>
    %68 = tpu.matmul %65, %66, %cst_36 {dimension_numbers = #tpu.dot_dimension_numbers<[1], [1], [0], [0], [0, 0, 1, 0], [], []>} : vector<40x8xf32>, vector<40x8xf32>, vector<40x40xf32> -> vector<40x40xf32>
    %cst_37 = arith.constant 0.353553385 : f32
    %69 = vector.broadcast %cst_37 : f32 to vector<40x40xf32>
    %70 = arith.mulf %68, %69 : vector<40x40xf32>
    %71 = math.exp %70 : vector<40x40xf32>
    %72 = arith.mulf %71, %64 : vector<40x40xf32>
    %cst_38 = arith.constant dense<0.000000e+00> : vector<40xf32>
    %73 = vector.multi_reduction <add>, %72, %cst_38 [1] : vector<40x40xf32> to vector<40xf32>
    %74 = vector.shape_cast %73 : vector<40xf32> to vector<40x1xf32>
    %75 = tpu.reciprocal %74 {approx = true} : vector<40x1xf32> -> vector<40x1xf32>
    %76 = vector.broadcast %75 : vector<40x1xf32> to vector<40x40xf32>
    %77 = arith.mulf %72, %76 : vector<40x40xf32>
    %cst_39 = arith.constant dense<0.000000e+00> : vector<40x8xf32>
    %78 = tpu.matmul %77, %67, %cst_39 {dimension_numbers = #tpu.dot_dimension_numbers<[1], [0], [0], [1], [0, 0, 1, 1], [], []>} : vector<40x40xf32>, vector<40x8xf32>, vector<40x8xf32> -> vector<40x8xf32>
    %79 = vector.extract_strided_slice %27 {offsets = [0, 8], sizes = [40, 8], strides = [1, 1]} : vector<40x96xf32> to vector<40x8xf32>
    %80 = vector.extract_strided_slice %27 {offsets = [0, 40], sizes = [40, 8], strides = [1, 1]} : vector<40x96xf32> to vector<40x8xf32>
    %81 = vector.extract_strided_slice %27 {offsets = [0, 72], sizes = [40, 8], strides = [1, 1]} : vector<40x96xf32> to vector<40x8xf32>
    %cst_40 = arith.constant dense<0.000000e+00> : vector<40x40xf32>
    %82 = tpu.matmul %79, %80, %cst_40 {dimension_numbers = #tpu.dot_dimension_numbers<[1], [1], [0], [0], [0, 0, 1, 0], [], []>} : vector<40x8xf32>, vector<40x8xf32>, vector<40x40xf32> -> vector<40x40xf32>
    %cst_41 = arith.constant 0.353553385 : f32
    %83 = vector.broadcast %cst_41 : f32 to vector<40x40xf32>
    %84 = arith.mulf %82, %83 : vector<40x40xf32>
    %85 = math.exp %84 : vector<40x40xf32>
    %86 = arith.mulf %85, %64 : vector<40x40xf32>
    %cst_42 = arith.constant dense<0.000000e+00> : vector<40xf32>
    %87 = vector.multi_reduction <add>, %86, %cst_42 [1] : vector<40x40xf32> to vector<40xf32>
    %88 = vector.shape_cast %87 : vector<40xf32> to vector<40x1xf32>
    %89 = tpu.reciprocal %88 {approx = true} : vector<40x1xf32> -> vector<40x1xf32>
    %90 = vector.broadcast %89 : vector<40x1xf32> to vector<40x40xf32>
    %91 = arith.mulf %86, %90 : vector<40x40xf32>
    %cst_43 = arith.constant dense<0.000000e+00> : vector<40x8xf32>
    %92 = tpu.matmul %91, %81, %cst_43 {dimension_numbers = #tpu.dot_dimension_numbers<[1], [0], [0], [1], [0, 0, 1, 1], [], []>} : vector<40x40xf32>, vector<40x8xf32>, vector<40x8xf32> -> vector<40x8xf32>
    %93 = vector.extract_strided_slice %27 {offsets = [0, 16], sizes = [40, 8], strides = [1, 1]} : vector<40x96xf32> to vector<40x8xf32>
    %94 = vector.extract_strided_slice %27 {offsets = [0, 48], sizes = [40, 8], strides = [1, 1]} : vector<40x96xf32> to vector<40x8xf32>
    %95 = vector.extract_strided_slice %27 {offsets = [0, 80], sizes = [40, 8], strides = [1, 1]} : vector<40x96xf32> to vector<40x8xf32>
    %cst_44 = arith.constant dense<0.000000e+00> : vector<40x40xf32>
    %96 = tpu.matmul %93, %94, %cst_44 {dimension_numbers = #tpu.dot_dimension_numbers<[1], [1], [0], [0], [0, 0, 1, 0], [], []>} : vector<40x8xf32>, vector<40x8xf32>, vector<40x40xf32> -> vector<40x40xf32>
    %cst_45 = arith.constant 0.353553385 : f32
    %97 = vector.broadcast %cst_45 : f32 to vector<40x40xf32>
    %98 = arith.mulf %96, %97 : vector<40x40xf32>
    %99 = math.exp %98 : vector<40x40xf32>
    %100 = arith.mulf %99, %64 : vector<40x40xf32>
    %cst_46 = arith.constant dense<0.000000e+00> : vector<40xf32>
    %101 = vector.multi_reduction <add>, %100, %cst_46 [1] : vector<40x40xf32> to vector<40xf32>
    %102 = vector.shape_cast %101 : vector<40xf32> to vector<40x1xf32>
    %103 = tpu.reciprocal %102 {approx = true} : vector<40x1xf32> -> vector<40x1xf32>
    %104 = vector.broadcast %103 : vector<40x1xf32> to vector<40x40xf32>
    %105 = arith.mulf %100, %104 : vector<40x40xf32>
    %cst_47 = arith.constant dense<0.000000e+00> : vector<40x8xf32>
    %106 = tpu.matmul %105, %95, %cst_47 {dimension_numbers = #tpu.dot_dimension_numbers<[1], [0], [0], [1], [0, 0, 1, 1], [], []>} : vector<40x40xf32>, vector<40x8xf32>, vector<40x8xf32> -> vector<40x8xf32>
    %107 = vector.extract_strided_slice %27 {offsets = [0, 24], sizes = [40, 8], strides = [1, 1]} : vector<40x96xf32> to vector<40x8xf32>
    %108 = vector.extract_strided_slice %27 {offsets = [0, 56], sizes = [40, 8], strides = [1, 1]} : vector<40x96xf32> to vector<40x8xf32>
    %109 = vector.extract_strided_slice %27 {offsets = [0, 88], sizes = [40, 8], strides = [1, 1]} : vector<40x96xf32> to vector<40x8xf32>
    %cst_48 = arith.constant dense<0.000000e+00> : vector<40x40xf32>
    %110 = tpu.matmul %107, %108, %cst_48 {dimension_numbers = #tpu.dot_dimension_numbers<[1], [1], [0], [0], [0, 0, 1, 0], [], []>} : vector<40x8xf32>, vector<40x8xf32>, vector<40x40xf32> -> vector<40x40xf32>
    %cst_49 = arith.constant 0.353553385 : f32
    %111 = vector.broadcast %cst_49 : f32 to vector<40x40xf32>
    %112 = arith.mulf %110, %111 : vector<40x40xf32>
    %113 = math.exp %112 : vector<40x40xf32>
    %114 = arith.mulf %113, %64 : vector<40x40xf32>
    %cst_50 = arith.constant dense<0.000000e+00> : vector<40xf32>
    %115 = vector.multi_reduction <add>, %114, %cst_50 [1] : vector<40x40xf32> to vector<40xf32>
    %116 = vector.shape_cast %115 : vector<40xf32> to vector<40x1xf32>
    %117 = tpu.reciprocal %116 {approx = true} : vector<40x1xf32> -> vector<40x1xf32>
    %118 = vector.broadcast %117 : vector<40x1xf32> to vector<40x40xf32>
    %119 = arith.mulf %114, %118 : vector<40x40xf32>
    %cst_51 = arith.constant dense<0.000000e+00> : vector<40x8xf32>
    %120 = tpu.matmul %119, %109, %cst_51 {dimension_numbers = #tpu.dot_dimension_numbers<[1], [0], [0], [1], [0, 0, 1, 1], [], []>} : vector<40x40xf32>, vector<40x8xf32>, vector<40x8xf32> -> vector<40x8xf32>
    %121 = tpu.concatenate %78, %92, %106, %120 in 1 : vector<40x8xf32>, vector<40x8xf32>, vector<40x8xf32>, vector<40x8xf32> -> vector<40x32xf32>
    %c0_52 = arith.constant 0 : index
    %c0_53 = arith.constant 0 : index
    %122 = vector.load %arg7[%c0_52, %c0_53] : memref<32x32xf32, #tpu.memory_space<vmem>>, vector<32x32xf32>
    %cst_54 = arith.constant dense<0.000000e+00> : vector<40x32xf32>
    %123 = tpu.matmul %121, %122, %cst_54 {dimension_numbers = #tpu.dot_dimension_numbers<[1], [0], [0], [1], [0, 0, 1, 1], [], []>} : vector<40x32xf32>, vector<32x32xf32>, vector<40x32xf32> -> vector<40x32xf32>
    %124 = vector.broadcast %3 : vector<1x32xf32> to vector<40x32xf32>
    %125 = arith.addf %123, %124 : vector<40x32xf32>
    %126 = arith.addf %22, %125 : vector<40x32xf32>
    %cst_55 = arith.constant dense<0.000000e+00> : vector<40xf32>
    %127 = vector.multi_reduction <add>, %126, %cst_55 [1] : vector<40x32xf32> to vector<40xf32>
    %128 = vector.shape_cast %127 : vector<40xf32> to vector<40x1xf32>
    %cst_56 = arith.constant 3.200000e+01 : f32
    %129 = vector.broadcast %cst_56 : f32 to vector<40x1xf32>
    %130 = arith.divf %128, %129 : vector<40x1xf32>
    %131 = vector.broadcast %130 : vector<40x1xf32> to vector<40x32xf32>
    %132 = arith.subf %126, %131 : vector<40x32xf32>
    %133 = arith.mulf %132, %132 : vector<40x32xf32>
    %cst_57 = arith.constant dense<0.000000e+00> : vector<40xf32>
    %134 = vector.multi_reduction <add>, %133, %cst_57 [1] : vector<40x32xf32> to vector<40xf32>
    %135 = vector.shape_cast %134 : vector<40xf32> to vector<40x1xf32>
    %cst_58 = arith.constant 3.200000e+01 : f32
    %136 = vector.broadcast %cst_58 : f32 to vector<40x1xf32>
    %137 = arith.divf %135, %136 : vector<40x1xf32>
    %cst_59 = arith.constant 9.99999974E-6 : f32
    %138 = vector.broadcast %cst_59 : f32 to vector<40x1xf32>
    %139 = arith.addf %137, %138 : vector<40x1xf32>
    %140 = math.rsqrt %139 : vector<40x1xf32>
    %141 = vector.broadcast %140 : vector<40x1xf32> to vector<40x32xf32>
    %142 = arith.mulf %132, %141 : vector<40x32xf32>
    %143 = vector.broadcast %7 : vector<1x32xf32> to vector<40x32xf32>
    %144 = arith.mulf %142, %143 : vector<40x32xf32>
    %145 = vector.broadcast %9 : vector<1x32xf32> to vector<40x32xf32>
    %146 = arith.addf %144, %145 : vector<40x32xf32>
    %c0_60 = arith.constant 0 : index
    %c0_61 = arith.constant 0 : index
    %147 = vector.load %arg8[%c0_60, %c0_61] : memref<32x64xf32, #tpu.memory_space<vmem>>, vector<32x64xf32>
    %cst_62 = arith.constant dense<0.000000e+00> : vector<40x64xf32>
    %148 = tpu.matmul %146, %147, %cst_62 {dimension_numbers = #tpu.dot_dimension_numbers<[1], [0], [0], [1], [0, 0, 1, 1], [], []>} : vector<40x32xf32>, vector<32x64xf32>, vector<40x64xf32> -> vector<40x64xf32>
    %c0_63 = arith.constant 0 : index
    %c0_64 = arith.constant 0 : index
    %149 = vector.load %arg9[%c0_63, %c0_64] : memref<1x64xf32, #tpu.memory_space<vmem>>, vector<1x64xf32>
    %150 = vector.broadcast %149 : vector<1x64xf32> to vector<40x64xf32>
    %151 = arith.addf %148, %150 : vector<40x64xf32>
    %152 = arith.mulf %151, %151 : vector<40x64xf32>
    %153 = arith.mulf %151, %152 : vector<40x64xf32>
    %cst_65 = arith.constant 4.471500e-02 : f32
    %154 = vector.broadcast %cst_65 : f32 to vector<40x64xf32>
    %155 = arith.mulf %154, %153 : vector<40x64xf32>
    %156 = arith.addf %151, %155 : vector<40x64xf32>
    %cst_66 = arith.constant 0.797884583 : f32
    %157 = vector.broadcast %cst_66 : f32 to vector<40x64xf32>
    %158 = arith.mulf %157, %156 : vector<40x64xf32>
    %159 = math.tanh %158 : vector<40x64xf32>
    %cst_67 = arith.constant 1.000000e+00 : f32
    %160 = vector.broadcast %cst_67 : f32 to vector<40x64xf32>
    %161 = arith.addf %160, %159 : vector<40x64xf32>
    %cst_68 = arith.constant 5.000000e-01 : f32
    %162 = vector.broadcast %cst_68 : f32 to vector<40x64xf32>
    %163 = arith.mulf %162, %161 : vector<40x64xf32>
    %164 = arith.mulf %151, %163 : vector<40x64xf32>
    %c0_69 = arith.constant 0 : index
    %c0_70 = arith.constant 0 : index
    %165 = vector.load %arg10[%c0_69, %c0_70] : memref<64x32xf32, #tpu.memory_space<vmem>>, vector<64x32xf32>
    %cst_71 = arith.constant dense<0.000000e+00> : vector<40x32xf32>
    %166 = tpu.matmul %164, %165, %cst_71 {dimension_numbers = #tpu.dot_dimension_numbers<[1], [0], [0], [1], [0, 0, 1, 1], [], []>} : vector<40x64xf32>, vector<64x32xf32>, vector<40x32xf32> -> vector<40x32xf32>
    %167 = vector.broadcast %5 : vector<1x32xf32> to vector<40x32xf32>
    %168 = arith.addf %166, %167 : vector<40x32xf32>
    %169 = arith.addf %146, %168 : vector<40x32xf32>
    %cst_72 = arith.constant dense<0.000000e+00> : vector<40xf32>
    %170 = vector.multi_reduction <add>, %169, %cst_72 [1] : vector<40x32xf32> to vector<40xf32>
    %171 = vector.shape_cast %170 : vector<40xf32> to vector<40x1xf32>
    %cst_73 = arith.constant 3.200000e+01 : f32
    %172 = vector.broadcast %cst_73 : f32 to vector<40x1xf32>
    %173 = arith.divf %171, %172 : vector<40x1xf32>
    %174 = vector.broadcast %173 : vector<40x1xf32> to vector<40x32xf32>
    %175 = arith.subf %169, %174 : vector<40x32xf32>
    %176 = arith.mulf %175, %175 : vector<40x32xf32>
    %cst_74 = arith.constant dense<0.000000e+00> : vector<40xf32>
    %177 = vector.multi_reduction <add>, %176, %cst_74 [1] : vector<40x32xf32> to vector<40xf32>
    %178 = vector.shape_cast %177 : vector<40xf32> to vector<40x1xf32>
    %cst_75 = arith.constant 3.200000e+01 : f32
    %179 = vector.broadcast %cst_75 : f32 to vector<40x1xf32>
    %180 = arith.divf %178, %179 : vector<40x1xf32>
    %cst_76 = arith.constant 9.99999974E-6 : f32
    %181 = vector.broadcast %cst_76 : f32 to vector<40x1xf32>
    %182 = arith.addf %180, %181 : vector<40x1xf32>
    %183 = math.rsqrt %182 : vector<40x1xf32>
    %184 = vector.broadcast %183 : vector<40x1xf32> to vector<40x32xf32>
    %185 = arith.mulf %175, %184 : vector<40x32xf32>
    %186 = vector.broadcast %11 : vector<1x32xf32> to vector<40x32xf32>
    %187 = arith.mulf %185, %186 : vector<40x32xf32>
    %188 = vector.broadcast %13 : vector<1x32xf32> to vector<40x32xf32>
    %189 = arith.addf %187, %188 : vector<40x32xf32>
    %cst_77 = arith.constant dense<0.000000e+00> : vector<40xf32>
    %190 = vector.multi_reduction <add>, %189, %cst_77 [1] : vector<40x32xf32> to vector<40xf32>
    %191 = vector.shape_cast %190 : vector<40xf32> to vector<40x1xf32>
    %cst_78 = arith.constant 3.200000e+01 : f32
    %192 = vector.broadcast %cst_78 : f32 to vector<40x1xf32>
    %193 = arith.divf %191, %192 : vector<40x1xf32>
    %194 = vector.broadcast %193 : vector<40x1xf32> to vector<40x32xf32>
    %195 = arith.subf %189, %194 : vector<40x32xf32>
    %196 = arith.mulf %195, %195 : vector<40x32xf32>
    %cst_79 = arith.constant dense<0.000000e+00> : vector<40xf32>
    %197 = vector.multi_reduction <add>, %196, %cst_79 [1] : vector<40x32xf32> to vector<40xf32>
    %198 = vector.shape_cast %197 : vector<40xf32> to vector<40x1xf32>
    %cst_80 = arith.constant 3.200000e+01 : f32
    %199 = vector.broadcast %cst_80 : f32 to vector<40x1xf32>
    %200 = arith.divf %198, %199 : vector<40x1xf32>
    %cst_81 = arith.constant 9.99999974E-6 : f32
    %201 = vector.broadcast %cst_81 : f32 to vector<40x1xf32>
    %202 = arith.addf %200, %201 : vector<40x1xf32>
    %203 = math.rsqrt %202 : vector<40x1xf32>
    %204 = vector.broadcast %203 : vector<40x1xf32> to vector<40x32xf32>
    %205 = arith.mulf %195, %204 : vector<40x32xf32>
    %206 = vector.broadcast %15 : vector<1x32xf32> to vector<40x32xf32>
    %207 = arith.mulf %205, %206 : vector<40x32xf32>
    %208 = vector.broadcast %17 : vector<1x32xf32> to vector<40x32xf32>
    %209 = arith.addf %207, %208 : vector<40x32xf32>
    %210 = vector.extract_strided_slice %209 {offsets = [0, 0], sizes = [8, 32], strides = [1, 1]} : vector<40x32xf32> to vector<8x32xf32>
    %c0_82 = arith.constant 0 : index
    %c0_83 = arith.constant 0 : index
    %211 = vector.load %arg11[%c0_82, %c0_83] : memref<160x16xf32, #tpu.memory_space<vmem>>, vector<32x16xf32>
    %cst_84 = arith.constant dense<0.000000e+00> : vector<8x16xf32>
    %212 = tpu.matmul %210, %211, %cst_84 {dimension_numbers = #tpu.dot_dimension_numbers<[1], [0], [0], [1], [0, 0, 1, 1], [], []>} : vector<8x32xf32>, vector<32x16xf32>, vector<8x16xf32> -> vector<8x16xf32>
    %213 = vector.extract_strided_slice %209 {offsets = [8, 0], sizes = [8, 32], strides = [1, 1]} : vector<40x32xf32> to vector<8x32xf32>
    %c32 = arith.constant 32 : index
    %c0_85 = arith.constant 0 : index
    %214 = vector.load %arg11[%c32, %c0_85] : memref<160x16xf32, #tpu.memory_space<vmem>>, vector<32x16xf32>
    %cst_86 = arith.constant dense<0.000000e+00> : vector<8x16xf32>
    %215 = tpu.matmul %213, %214, %cst_86 {dimension_numbers = #tpu.dot_dimension_numbers<[1], [0], [0], [1], [0, 0, 1, 1], [], []>} : vector<8x32xf32>, vector<32x16xf32>, vector<8x16xf32> -> vector<8x16xf32>
    %216 = arith.addf %212, %215 : vector<8x16xf32>
    %217 = vector.extract_strided_slice %209 {offsets = [16, 0], sizes = [8, 32], strides = [1, 1]} : vector<40x32xf32> to vector<8x32xf32>
    %c64 = arith.constant 64 : index
    %c0_87 = arith.constant 0 : index
    %218 = vector.load %arg11[%c64, %c0_87] : memref<160x16xf32, #tpu.memory_space<vmem>>, vector<32x16xf32>
    %cst_88 = arith.constant dense<0.000000e+00> : vector<8x16xf32>
    %219 = tpu.matmul %217, %218, %cst_88 {dimension_numbers = #tpu.dot_dimension_numbers<[1], [0], [0], [1], [0, 0, 1, 1], [], []>} : vector<8x32xf32>, vector<32x16xf32>, vector<8x16xf32> -> vector<8x16xf32>
    %220 = arith.addf %216, %219 : vector<8x16xf32>
    %221 = vector.extract_strided_slice %209 {offsets = [24, 0], sizes = [8, 32], strides = [1, 1]} : vector<40x32xf32> to vector<8x32xf32>
    %c96 = arith.constant 96 : index
    %c0_89 = arith.constant 0 : index
    %222 = vector.load %arg11[%c96, %c0_89] : memref<160x16xf32, #tpu.memory_space<vmem>>, vector<32x16xf32>
    %cst_90 = arith.constant dense<0.000000e+00> : vector<8x16xf32>
    %223 = tpu.matmul %221, %222, %cst_90 {dimension_numbers = #tpu.dot_dimension_numbers<[1], [0], [0], [1], [0, 0, 1, 1], [], []>} : vector<8x32xf32>, vector<32x16xf32>, vector<8x16xf32> -> vector<8x16xf32>
    %224 = arith.addf %220, %223 : vector<8x16xf32>
    %225 = vector.extract_strided_slice %209 {offsets = [32, 0], sizes = [8, 32], strides = [1, 1]} : vector<40x32xf32> to vector<8x32xf32>
    %c128 = arith.constant 128 : index
    %c0_91 = arith.constant 0 : index
    %226 = vector.load %arg11[%c128, %c0_91] : memref<160x16xf32, #tpu.memory_space<vmem>>, vector<32x16xf32>
    %cst_92 = arith.constant dense<0.000000e+00> : vector<8x16xf32>
    %227 = tpu.matmul %225, %226, %cst_92 {dimension_numbers = #tpu.dot_dimension_numbers<[1], [0], [0], [1], [0, 0, 1, 1], [], []>} : vector<8x32xf32>, vector<32x16xf32>, vector<8x16xf32> -> vector<8x16xf32>
    %228 = arith.addf %224, %227 : vector<8x16xf32>
    %c0_93 = arith.constant 0 : index
    %c0_94 = arith.constant 0 : index
    %229 = vector.load %arg12[%c0_93, %c0_94] : memref<1x16xf32, #tpu.memory_space<vmem>>, vector<1x16xf32>
    %230 = vector.broadcast %229 : vector<1x16xf32> to vector<8x16xf32>
    %231 = arith.addf %228, %230 : vector<8x16xf32>
    %c0_95 = arith.constant 0 : index
    %c0_96 = arith.constant 0 : index
    %232 = vector.load %arg2[%c0_95, %c0_96] : memref<8x2xf32, #tpu.memory_space<vmem>>, vector<8x1xf32>
    %c0_97 = arith.constant 0 : index
    %c1_98 = arith.constant 1 : index
    %233 = vector.load %arg2[%c0_97, %c1_98] : memref<8x2xf32, #tpu.memory_space<vmem>>, vector<8x1xf32>
    %234 = vector.broadcast %232 : vector<8x1xf32> to vector<8x16xf32>
    %235 = arith.mulf %231, %234 : vector<8x16xf32>
    %236 = vector.broadcast %233 : vector<8x1xf32> to vector<8x16xf32>
    %237 = arith.addf %235, %236 : vector<8x16xf32>
    %c0_99 = arith.constant 0 : index
    %c0_100 = arith.constant 0 : index
    %238 = vector.load %arg13[%c0_99, %c0_100] : memref<8x8xf32, #tpu.memory_space<vmem>>, vector<8x8xf32>
    %cst_101 = arith.constant dense<0.000000e+00> : vector<8x16xf32>
    %239 = tpu.matmul %238, %237, %cst_101 {dimension_numbers = #tpu.dot_dimension_numbers<[1], [0], [0], [1], [0, 0, 1, 1], [], []>} : vector<8x8xf32>, vector<8x16xf32>, vector<8x16xf32> -> vector<8x16xf32>
    %c0_102 = arith.constant 0 : index
    %c0_103 = arith.constant 0 : index
    %240 = vector.load %arg14[%c0_102, %c0_103] : memref<8x1xf32, #tpu.memory_space<vmem>>, vector<8x1xf32>
    %241 = vector.broadcast %240 : vector<8x1xf32> to vector<8x16xf32>
    %242 = arith.addf %239, %241 : vector<8x16xf32>
    %c0_104 = arith.constant 0 : index
    %c0_105 = arith.constant 0 : index
    %243 = vector.load %arg15[%c0_104, %c0_105] : memref<8x16xf32, #tpu.memory_space<vmem>>, vector<8x16xf32>
    tpu.vector_store %arg15[%c0_104, %c0_105], %242 {strides = array<i32>} : memref<8x16xf32, #tpu.memory_space<vmem>>, vector<8x16xf32>,
    return
  }
  func.func @transform_0(%arg0: i32) -> (i32, i32) {
    %c0_i32 = arith.constant 0 : i32
    %c0_i32_0 = arith.constant 0 : i32
    %c0_i32_1 = arith.constant 0 : i32
    return %c0_i32, %c0_i32_0 : i32, i32
  }
  func.func @transform_1(%arg0: i32) -> (i32, i32) {
    %c0_i32 = arith.constant 0 : i32
    %c0_i32_0 = arith.constant 0 : i32
    %c0_i32_1 = arith.constant 0 : i32
    return %c0_i32, %c0_i32_0 : i32, i32
  }
  func.func @transform_2(%arg0: i32) -> (i32, i32) {
    %c0_i32 = arith.constant 0 : i32
    %c0_i32_0 = arith.constant 0 : i32
    %c0_i32_1 = arith.constant 0 : i32
    return %c0_i32, %c0_i32_0 : i32, i32
  }
  func.func @transform_3(%arg0: i32) -> (i32, i32, i32) {
    %c0_i32 = arith.constant 0 : i32
    %c0_i32_0 = arith.constant 0 : i32
    %c0_i32_1 = arith.constant 0 : i32
    %c0_i32_2 = arith.constant 0 : i32
    return %c0_i32, %c0_i32_0, %c0_i32_1 : i32, i32, i32
  }
  func.func @transform_4(%arg0: i32) -> (i32, i32) {
    %c0_i32 = arith.constant 0 : i32
    %c0_i32_0 = arith.constant 0 : i32
    %c0_i32_1 = arith.constant 0 : i32
    return %c0_i32, %c0_i32_0 : i32, i32
  }
  func.func @transform_5(%arg0: i32) -> (i32, i32) {
    %c0_i32 = arith.constant 0 : i32
    %c0_i32_0 = arith.constant 0 : i32
    %c0_i32_1 = arith.constant 0 : i32
    return %c0_i32, %c0_i32_0 : i32, i32
  }
  func.func @transform_6(%arg0: i32) -> (i32, i32) {
    %c0_i32 = arith.constant 0 : i32
    %c0_i32_0 = arith.constant 0 : i32
    %c0_i32_1 = arith.constant 0 : i32
    return %c0_i32, %c0_i32_0 : i32, i32
  }
  func.func @transform_7(%arg0: i32) -> (i32, i32) {
    %c0_i32 = arith.constant 0 : i32
    %c0_i32_0 = arith.constant 0 : i32
    %c0_i32_1 = arith.constant 0 : i32
    return %c0_i32, %c0_i32_0 : i32, i32
  }
  func.func @transform_8(%arg0: i32) -> (i32, i32) {
    %c0_i32 = arith.constant 0 : i32
    %c0_i32_0 = arith.constant 0 : i32
    %c0_i32_1 = arith.constant 0 : i32
    return %c0_i32, %c0_i32_0 : i32, i32
  }
  func.func @transform_9(%arg0: i32) -> (i32, i32) {
    %c0_i32 = arith.constant 0 : i32
    %c0_i32_0 = arith.constant 0 : i32
    %c0_i32_1 = arith.constant 0 : i32
    return %c0_i32, %c0_i32_0 : i32, i32
  }
  func.func @transform_10(%arg0: i32) -> (i32, i32) {
    %c0_i32 = arith.constant 0 : i32
    %c0_i32_0 = arith.constant 0 : i32
    %c0_i32_1 = arith.constant 0 : i32
    return %c0_i32, %c0_i32_0 : i32, i32
  }
  func.func @transform_11(%arg0: i32) -> (i32, i32) {
    %c0_i32 = arith.constant 0 : i32
    %c0_i32_0 = arith.constant 0 : i32
    %c0_i32_1 = arith.constant 0 : i32
    return %c0_i32, %c0_i32_0 : i32, i32
  }
  func.func @transform_12(%arg0: i32) -> (i32, i32) {
    %c0_i32 = arith.constant 0 : i32
    %c0_i32_0 = arith.constant 0 : i32
    %c0_i32_1 = arith.constant 0 : i32
    return %c0_i32, %c0_i32_0 : i32, i32
  }
  func.func @transform_13(%arg0: i32) -> (i32, i32) {
    %c0_i32 = arith.constant 0 : i32
    %c0_i32_0 = arith.constant 0 : i32
    %c0_i32_1 = arith.constant 0 : i32
    return %c0_i32, %c0_i32_0 : i32, i32
  }
  func.func @transform_14(%arg0: i32) -> (i32, i32) {
    %c0_i32 = arith.constant 0 : i32
    %c0_i32_0 = arith.constant 0 : i32
    %c0_i32_1 = arith.constant 0 : i32
    return %c0_i32, %c0_i32_0 : i32, i32
  }
}

</mosaic_0001>

<bundles_post_ra>
// kernel: pattn_forward.1
= control target key start
LH: loop header
LB: loop body
LE: loop exit
PB: predicated region body
PF: predicated region fallthrough
CT: control target
= control target key end

     0   :  { %vm93_vm0 = vcmask 1043456   ;;  %v3834_v2 = vmov 0.0   ;;  %vm3835_vm1 = vmmov 0   ;;  %vm77_vm2 = vcmask 31744   ;;  %s4778_s0 = inlined_call_operand.vmem [shape: f32[40,4], index: 0, kind: input, shape index: {}]   ;;  %s4779_s1 = inlined_call_operand.vmem [shape: f32[8,2], index: 1, kind: input, shape index: {}]   ;;  %s4780_s2 = inlined_call_operand.vmem [shape: f32[4,32], index: 2, kind: input, shape index: {}]   ;;  %s4781_s3 = inlined_call_operand.vmem [shape: f32[9,1,32], index: 3, kind: input, shape index: {}]   ;;  %s4782_s4 = inlined_call_operand.vmem [shape: f32[32,96], index: 4, kind: input, shape index: {}]   ;;  %s4783_s5 = inlined_call_operand.vmem [shape: f32[1,96], index: 5, kind: input, shape index: {}]   ;;  %s4784_s6 = inlined_call_operand.vmem [shape: f32[32,32], index: 6, kind: input, shape index: {}]   ;;  %s4785_s7 = inlined_call_operand.vmem [shape: f32[32,64], index: 7, kind: input, shape index: {}]   ;;  %s4786_s8 = inlined_call_operand.vmem [shape: f32[1,64], index: 8, kind: input, shape index: {}]   ;;  %s4787_s9 = inlined_call_operand.vmem [shape: f32[64,32], index: 9, kind: input, shape index: {}]   ;;  %s4788_s10 = inlined_call_operand.vmem [shape: f32[160,16], index: 10, kind: input, shape index: {}]   ;;  %s4789_s11 = inlined_call_operand.vmem [shape: f32[1,16], index: 11, kind: input, shape index: {}]   ;;  %s4790_s12 = inlined_call_operand.vmem [shape: f32[8,8], index: 12, kind: input, shape index: {}]   ;;  %s4791_s13 = inlined_call_operand.vmem [shape: f32[8,1], index: 13, kind: input, shape index: {}]   ;;  %s4792_s14 = inlined_call_operand.hbm [shape: f32[8,16], index: 14, kind: output, shape index: {}]  }
   0x1   :  { %v70_v0 = vld [vmem:[%s4780_s2] sm:$0xf]  ;;  %3094 = vmatprep.subr.mxu0 %v3834_v2  ;;  %3096 = vmatprep.mubr.msk.f32.mxu0 %vm3835_vm1, %v3834_v2  ;;  %v3836_v3 = vmov 0.0|0.0   ;;  %v188_v5 = vld [vmem:[%s4782_s4 + $0x8] sm:$0xff] }
   0x2   :  { %v65_v1 = vld [vmem:[%s4778_s0] sm:$0xff]  ;;  %3095 = vmatpush3.msk.msra.mxu0 %vm93_vm0, %v70_v0  ;;  %3471 = vmatprep.subr.bf16.mxu1 %v3836_v3 }
   0x3   :  { %v187_v4 = vld [vmem:[%s4782_s4] sm:$0xff]  ;;  %3097 = vmatmul.mubr.msk.f32.vlgmr.msra.gmra.mrb[0].mxu0 %vm77_vm2, %v65_v1  ;;  %3119 = vmatprep.mubr.msk.f32.mxu1 %vm3835_vm1, %v3834_v2 }
   0x4   :  { %v3472_v6 = vpack.c.bf16 %v188_v5, %v187_v4 }
   0x5   :  { %19 = vsyncpa [#allocation3], 0  ;;  %3099 = vmatprep.mubr.msk.f32.mxu0 %vm3835_vm1, %v3834_v2  ;;  %v66_v7 = vld [vmem:[%s4778_s0 + $0x8] sm:$0xff]  ;;  %3477 = vmatprep.subr.bf16.mxu0 %v3836_v3  ;;  %v67_v8 = vld [vmem:[%s4778_s0 + $0x10] sm:$0xff]  ;;  %vm198_vm3 = vcmask 261120   ;;  %s3837_s18 = smov 96   ;;  %v304_v51 = vlaneseq }
   0x6   :  { %3473 = vmatpush3.bf16.msra.mxu1 %v3472_v6  ;;  %v68_v9 = vld [vmem:[%s4778_s0 + $0x18] sm:$0xff]  ;;  %v69_v10 = vld [vmem:[%s4778_s0 + $0x20] sm:$0xff]  ;;  %v189_v11 = vld [vmem:[%s4782_s4 + $0x10] sm:$0xff]  ;;  %s3839_s2 = smov 80   ;;  %s3840_s19 = smov 120   ;;  %vm414_vm4 = vcmask 64512  }
   0x7   :  { %3474 = vmatprep.subr.bf16.mxu1 %v3836_v3  ;;  %3100 = vmatmul.mubr.msk.f32.gmra.mrb[2].mxu0 %vm77_vm2, %v66_v7  ;;  %v190_v12 = vld [vmem:[%s4782_s4 + $0x18] sm:$0xff]  ;;  %v2832_v14 = vld [vmem:[%s4781_s3] ss:$0 sm:$0xff]  ;;  %s3841_s20 = smov 72   ;;  %s3842_s21 = smov 112   ;;  %vm4076_vm5 = vmpackc.low %vm414_vm4, %vm414_vm4  ;;  %vm545_vm8 = vcmask 326656  }
   0x8   :  { %3102 = vmatprep.mubr.msk.f32.mxu0 %vm3835_vm1, %v3834_v2  ;;  %v3475_v13 = vpack.c.bf16 %v190_v12, %v189_v11  ;;  %v2839_v32 = vld [vmem:[%s4783_s5] ss:$0 sm:$0xff]  ;;  %s3838_s5 = smov 88   ;;  %s3843_s22 = smov 104   ;;  %vm1641_vm12 = vcmask 130048   ;;  %vm1647_vm13 = vcmask 195584  }
   0x9   :  { %s3844_s23 = smov 64   ;;  %s3845_s24 = smov 56   ;;  %vm2036_vm14 = vcmask 523264  }
   0xa   :  { %3476 = vmatpush3.bf16.msra.mxu1 %v3475_v13  ;;  %s3846_s25 = smov 48   ;;  %s3847_s26 = smov 40  }
   0xb   :  { %3103 = vmatmul.mubr.msk.f32.gmra.mrb[4].mxu0 %vm77_vm2, %v67_v8  ;;  %3485 = vmatprep.subr.bf16.mxu1 %v3836_v3  ;;  %s3848_s27 = smov 8   ;;  %s3853_s29 = smov [#allocation2]  }
   0xc   :  { %3105 = vmatprep.mubr.msk.f32.mxu0 %vm3835_vm1, %v3834_v2  ;;  %s2816_s30 = sshll.u32 %s3853_s29, 4  ;;  %s2817_s30 = int_to_ptr.vmem [resolvable:$true] %s2816_s30 }
   0xd   :  { %p3815_p1 = scmp.lt.s32.totalorder %s2817_s30, %s2817_s30 }
   0xf   :  { %3106 = vmatmul.mubr.msk.f32.gmra.mrb[6].mxu0 %vm77_vm2, %v68_v9 }
  0x10   :  { %3108 = vmatprep.mubr.msk.f32.mxu0 %vm3835_vm1, %v3834_v2 }
  0x13   :  { %3109 = vmatmul.mubr.msk.f32.gmra.mrb[8].mxu0 %vm77_vm2, %v69_v10 }
  0x14   :  { %3144 = vmatprep.mubr.msk.f32.mxu0 %vm3835_vm1, %v3834_v2 }
  0xd6   :  { %v163_v15 = vpop.f32.mrb[0].mxu0 }
  0xd7   :  { %v3986_v16 = vadd.f32 %v2832_v14, %v163_v15  ;;  %v3098_v17 = vpop.f32.mrb[1].mxu0 }
  0xd9   :  { %3120 = vmatmul.mubr.msk.f32.vlgmr.msra.gmra.mrb[0].mxu1 %vm198_vm3, %v3986_v16 }
  0xda   :  { %v168_v18 = vpop.f32.mrb[2].mxu0  ;;  %3122 = vmatprep.mubr.msk.f32.mxu1 %vm3835_vm1, %v3834_v2 }
  0xdb   :  { %v3992_v19 = vadd.f32 %v2832_v14, %v168_v18  ;;  %v3101_v20 = vpop.f32.mrb[3].mxu0 }
  0xdd   :  { %3123 = vmatmul.mubr.msk.f32.gmra.mrb[2].mxu1 %vm198_vm3, %v3992_v19 }
  0xde   :  { %v173_v21 = vpop.f32.mrb[4].mxu0  ;;  %3125 = vmatprep.mubr.msk.f32.mxu1 %vm3835_vm1, %v3834_v2 }
  0xdf   :  { %v3998_v22 = vadd.f32 %v2832_v14, %v173_v21  ;;  %v3104_v23 = vpop.f32.mrb[5].mxu0 }
  0xe1   :  { %3126 = vmatmul.mubr.msk.f32.gmra.mrb[4].mxu1 %vm198_vm3, %v3998_v22 }
  0xe2   :  { %v178_v24 = vpop.f32.mrb[6].mxu0  ;;  %3128 = vmatprep.mubr.msk.f32.mxu1 %vm3835_vm1, %v3834_v2 }
  0xe3   :  { %v4004_v25 = vadd.f32 %v2832_v14, %v178_v24  ;;  %v3107_v26 = vpop.f32.mrb[7].mxu0 }
  0xe5   :  { %3129 = vmatmul.mubr.msk.f32.gmra.mrb[6].mxu1 %vm198_vm3, %v4004_v25 }
  0xe6   :  { %v183_v27 = vpop.f32.mrb[8].mxu0  ;;  %3131 = vmatprep.mubr.msk.f32.mxu1 %vm3835_vm1, %v3834_v2 }
  0xe7   :  { %v4010_v28 = vadd.f32 %v2832_v14, %v183_v27  ;;  %v3110_v29 = vpop.f32.mrb[9].mxu0 }
  0xe9   :  { %3132 = vmatmul.mubr.msk.f32.gmra.mrb[8].mxu1 %vm198_vm3, %v4010_v28 }
  0xea   :  { %3169 = vmatprep.mubr.msk.f32.mxu1 %vm3835_vm1, %v3834_v2 }
 0x1ac   :  { %v280_v30 = vpop.f32.mrb[0].mxu1 }
 0x1ad   :  { %v3121_v31 = vpop.f32.mrb[1].mxu1  ;;  %v4019_v34 = vadd.f32 %v2839_v32, %v280_v30 }
 0x1b0   :  { %v285_v33 = vpop.f32.mrb[2].mxu1 }
 0x1b1   :  { %v4021_v35 = vadd.f32 %v2839_v32, %v285_v33  ;;  %v3124_v36 = vpop.f32.mrb[3].mxu1 }
 0x1b3   :  { %v4025_v37 = vpack.i.bf16 %v4021_v35, %v4019_v34 }
 0x1b4   :  { %v290_v38 = vpop.f32.mrb[4].mxu1 }
 0x1b5   :  { %3608 = vrot.lane.b32.xlu0 %v4025_v37, %s3837_s18  ;;  %v3127_v39 = vpop.f32.mrb[5].mxu1  ;;  %v4028_v41 = vadd.f32 %v2839_v32, %v290_v38 }
 0x1b8   :  { %v295_v40 = vpop.f32.mrb[6].mxu1 }
 0x1b9   :  { %v4030_v42 = vadd.f32 %v2839_v32, %v295_v40  ;;  %v3130_v43 = vpop.f32.mrb[7].mxu1 }
 0x1bb   :  { %v4034_v44 = vpack.i.bf16 %v4030_v42, %v4028_v41 }
 0x1bc   :  { %v300_v45 = vpop.f32.mrb[8].mxu1 }
 0x1bd   :  { %v4036_v46 = vadd.f32 %v2839_v32, %v300_v45  ;;  %3613 = vrot.lane.b32.xlu0 %v4034_v44, %s3837_s18  ;;  %v3133_v47 = vpop.f32.mrb[9].mxu1 }
 0x1bf   :  { %412 = vrot.lane.b32.xlu1 %v4036_v46, %s3837_s18  ;;  %s3849_s18 = smov 16  }
 0x1c1   :  { %3623 = vrot.lane.b32.xlu0 %v4034_v44, %s3838_s5 }
 0x1c3   :  { %3618 = vrot.lane.b32.xlu1 %v4025_v37, %s3838_s5 }
 0x1c5   :  { %3628 = vrot.lane.b32.xlu0 %v4025_v37, %s3839_s2 }
 0x1c7   :  { %709 = vrot.lane.b32.xlu1 %v4036_v46, %s3838_s5 }
 0x1c9   :  { %693 = vrot.lane.b32.xlu0 %v4021_v35, %s3840_s19 }
 0x1cb   :  { %691 = vrot.lane.b32.xlu1 %v4019_v34, %s3840_s19 }
 0x1cd   :  { %695 = vrot.lane.b32.xlu0 %v4028_v41, %s3840_s19 }
 0x1cf   :  { %3633 = vrot.lane.b32.xlu1 %v4034_v44, %s3839_s2 }
 0x1d1   :  { %699 = vrot.lane.b32.xlu0 %v4036_v46, %s3840_s19 }
 0x1d3   :  { %697 = vrot.lane.b32.xlu1 %v4030_v42, %s3840_s19 }
 0x1d5   :  { %3638 = vrot.lane.b32.xlu0 %v4025_v37, %s3841_s20 }
 0x1d7   :  { %1004 = vrot.lane.b32.xlu1 %v4036_v46, %s3839_s2 }
 0x1d9   :  { %988 = vrot.lane.b32.xlu0 %v4021_v35, %s3842_s21 }
 0x1db   :  { %986 = vrot.lane.b32.xlu1 %v4019_v34, %s3842_s21 }
 0x1dd   :  { %990 = vrot.lane.b32.xlu0 %v4028_v41, %s3842_s21 }
 0x1df   :  { %3643 = vrot.lane.b32.xlu1 %v4034_v44, %s3841_s20 }
 0x1e1   :  { %994 = vrot.lane.b32.xlu0 %v4036_v46, %s3842_s21 }
 0x1e3   :  { %992 = vrot.lane.b32.xlu1 %v4030_v42, %s3842_s21 }
 0x1e5   :  { %1281 = vrot.lane.b32.xlu0 %v4019_v34, %s3843_s22 }
 0x1e7   :  { %1299 = vrot.lane.b32.xlu1 %v4036_v46, %s3841_s20 }
 0x1e9   :  { %1285 = vrot.lane.b32.xlu0 %v4028_v41, %s3843_s22 }
 0x1eb   :  { %1283 = vrot.lane.b32.xlu1 %v4021_v35, %s3843_s22 }
 0x1ed   :  { %1289 = vrot.lane.b32.xlu0 %v4036_v46, %s3843_s22 }
 0x1ef   :  { %1287 = vrot.lane.b32.xlu1 %v4030_v42, %s3843_s22 }
 0x1f1   :  { %3653 = vrot.lane.b32.xlu0 %v4034_v44, %s3844_s23 }
 0x1f3   :  { %3648 = vrot.lane.b32.xlu1 %v4025_v37, %s3844_s23 }
 0x1f5   :  { %3658 = vrot.lane.b32.xlu0 %v4025_v37, %s3845_s24 }
 0x1f7   :  { %3663 = vrot.lane.b32.xlu1 %v4034_v44, %s3845_s24 }
 0x1f9   :  { %3668 = vrot.lane.b32.xlu0 %v4025_v37, %s3846_s25 }
 0x1fb   :  { %579 = vrot.lane.b32.xlu1 %v4036_v46, %s3844_s23 }
 0x1fd   :  { %3673 = vrot.lane.b32.xlu0 %v4034_v44, %s3846_s25 }
 0x1ff   :  { %874 = vrot.lane.b32.xlu1 %v4036_v46, %s3845_s24 }
 0x227   :  { %v3609_v48 = vpop.permute.xlu0 %3608 }
 0x228   :  { %v3611_v49 = vunpack.i.h.bf16 %v3609_v48  ;;  %v3610_v50 = vunpack.i.l.bf16 %v3609_v48 }
 0x22a   :  { %v3478_v52 = vpack.c.bf16 %v3611_v49, %v3610_v50 }
 0x22c   :  { %3480 = vmatpush3.bf16.xpose.msk.msra.mxu0 %vm4076_vm5, %v3478_v52 }
 0x22d   :  { %3481 = vmatprep.subr.bf16.mxu0 %v3836_v3 }
 0x22f   :  { %v3614_v53 = vpop.permute.xlu0 %3613 }
 0x230   :  { %v3616_v54 = vunpack.i.h.bf16 %v3614_v53  ;;  %v3615_v55 = vunpack.i.l.bf16 %v3614_v53 }
 0x231   :  { %v413_v56 = vpop.permute.xlu1 %412 }
 0x232   :  { %v3482_v57 = vpack.c.bf16 %v3616_v54, %v3615_v55 }
 0x233   :  { %v3624_v58 = vpop.permute.xlu0 %3623 }
 0x234   :  { %3484 = vmatpush3.bf16.xpose.msk.msra.mxu0 %vm4076_vm5, %v3482_v57  ;;  %v3626_v7 = vunpack.i.h.bf16 %v3624_v58  ;;  %v3625_v8 = vunpack.i.l.bf16 %v3624_v58 }
 0x235   :  { %v3619_v59 = vpop.permute.xlu1 %3618  ;;  %3142 = vmatprep.subr.mxu0 %v3834_v2 }
 0x236   :  { %v3621_v62 = vunpack.i.h.bf16 %v3619_v59  ;;  %v3620_v63 = vunpack.i.l.bf16 %v3619_v59  ;;  %v3496_v11 = vpack.c.bf16 %v3626_v7, %v3625_v8 }
 0x237   :  { %v3629_v60 = vpop.permute.xlu0 %3628 }
 0x238   :  { %v3492_v4 = vpack.c.bf16 %v3621_v62, %v3620_v63  ;;  %v3631_v17 = vunpack.i.h.bf16 %v3629_v60  ;;  %v3630_v18 = vunpack.i.l.bf16 %v3629_v60  ;;  %v4182_v60 = vshrl.u32 %v304_v51, 7 }
 0x239   :  { %v710_v61 = vpop.permute.xlu1 %709 }
 0x23a   :  { %v3506_v23 = vpack.c.bf16 %v3631_v17, %v3630_v18 }
 0x23b   :  { %v694_v0 = vpop.permute.xlu0 %693 }
 0x23c   :  { %3143 = vmatpush3.xpose.msk.msra.mxu0 %vm414_vm4, %v413_v56 }
 0x23d   :  { %v692_v1 = vpop.permute.xlu1 %691  ;;  %3491 = vmatprep.subr.bf16.mxu0 %v3836_v3 }
 0x23f   :  { %v696_v5 = vpop.permute.xlu0 %695  ;;  %3145 = vmatmul.mubr.msk.f32.vlgmr.msra.gmra.mrb[10].mxu0 %vm414_vm4, %v4019_v34 }
 0x240   :  { %3494 = vmatpush3.bf16.xpose.msk.msra.mxu0 %vm4076_vm5, %v3492_v4  ;;  %3147 = vmatprep.mubr.msk.f32.mxu0 %vm3835_vm1, %v3834_v2  ;;  %v316_v4 = vand.u32 7, %v4182_v60 }
 0x241   :  { %v3634_v6 = vpop.permute.xlu1 %3633  ;;  %3495 = vmatprep.subr.bf16.mxu0 %v3836_v3 }
 0x242   :  { %v3636_v27 = vunpack.i.h.bf16 %v3634_v6  ;;  %v3635_v29 = vunpack.i.l.bf16 %v3634_v6  ;;  %v306_v6 = vadd.s32 8, %v4182_v60 }
 0x243   :  { %v700_v9 = vpop.permute.xlu0 %699  ;;  %3148 = vmatmul.mubr.msk.f32.gmra.mrb[12].mxu0 %vm414_vm4, %v4021_v35 }
 0x244   :  { %3150 = vmatprep.mubr.msk.f32.mxu0 %vm3835_vm1, %v3834_v2  ;;  %v3510_v32 = vpack.c.bf16 %v3636_v27, %v3635_v29 }
 0x245   :  { %v698_v10 = vpop.permute.xlu1 %697 }
 0x247   :  { %v3639_v12 = vpop.permute.xlu0 %3638  ;;  %3151 = vmatmul.mubr.msk.f32.gmra.mrb[14].mxu0 %vm414_vm4, %v4028_v41 }
 0x248   :  { %3498 = vmatpush3.bf16.xpose.msk.msra.mxu0 %vm4076_vm5, %v3496_v11  ;;  %3153 = vmatprep.mubr.msk.f32.mxu0 %vm3835_vm1, %v3834_v2  ;;  %v3641_v38 = vunpack.i.h.bf16 %v3639_v12  ;;  %v3640_v39 = vunpack.i.l.bf16 %v3639_v12  ;;  %v323_v11 = vand.u32 7, %v306_v6  ;;  %v307_v12 = vadd.s32 16, %v4182_v60 }
 0x249   :  { %v1005_v13 = vpop.permute.xlu1 %1004  ;;  %3192 = vmatprep.subr.mxu0 %v3834_v2 }
 0x24a   :  { %v330_v18 = vand.u32 7, %v307_v12 }
 0x24b   :  { %v989_v14 = vpop.permute.xlu0 %988  ;;  %3154 = vmatmul.mubr.msk.f32.gmra.mrb[16].mxu0 %vm414_vm4, %v4030_v42  ;;  %v3520_v42 = vpack.c.bf16 %v3641_v38, %v3640_v39 }
 0x24c   :  { %3156 = vmatprep.mubr.msk.f32.mxu0 %vm3835_vm1, %v3834_v2 }
 0x24d   :  { %v987_v15 = vpop.permute.xlu1 %986 }
 0x24f   :  { %v991_v20 = vpop.permute.xlu0 %990  ;;  %3157 = vmatmul.mubr.msk.f32.gmra.mrb[18].mxu0 %vm414_vm4, %v4036_v46 }
 0x250   :  { %3193 = vmatpush3.xpose.msk.msra.mxu0 %vm414_vm4, %v710_v61  ;;  %3194 = vmatprep.mubr.msk.f32.mxu0 %vm3835_vm1, %v3834_v2  ;;  %v311_v61 = vand.u32 127, %v304_v51 }
 0x251   :  { %v3644_v21 = vpop.permute.xlu1 %3643  ;;  %3505 = vmatprep.subr.bf16.mxu0 %v3836_v3 }
 0x252   :  { %v3646_v50 = vunpack.i.h.bf16 %v3644_v21  ;;  %v3645_v52 = vunpack.i.l.bf16 %v3644_v21 }
 0x253   :  { %v995_v24 = vpop.permute.xlu0 %994  ;;  %3195 = vmatmul.mubr.msk.f32.vlgmr.msra.gmra.mrb[20].mxu0 %vm414_vm4, %v692_v1 }
 0x254   :  { %3508 = vmatpush3.bf16.xpose.msk.msra.mxu0 %vm4076_vm5, %v3506_v23  ;;  %3197 = vmatprep.mubr.msk.f32.mxu0 %vm3835_vm1, %v3834_v2  ;;  %v3524_v55 = vpack.c.bf16 %v3646_v50, %v3645_v52 }
 0x255   :  { %v993_v26 = vpop.permute.xlu1 %992  ;;  %3509 = vmatprep.subr.bf16.mxu0 %v3836_v3 }
 0x257   :  { %v1282_v30 = vpop.permute.xlu0 %1281  ;;  %3198 = vmatmul.mubr.msk.f32.gmra.mrb[22].mxu0 %vm414_vm4, %v694_v0 }
 0x258   :  { %3200 = vmatprep.mubr.msk.f32.mxu0 %vm3835_vm1, %v3834_v2 }
 0x259   :  { %v1300_v31 = vpop.permute.xlu1 %1299 }
 0x25b   :  { %v1286_v33 = vpop.permute.xlu0 %1285  ;;  %3201 = vmatmul.mubr.msk.f32.gmra.mrb[24].mxu0 %vm414_vm4, %v696_v5  ;;  %v4185_v5 = vand.u32 7, %v311_v61 }
 0x25c   :  { %3512 = vmatpush3.bf16.xpose.msk.msra.mxu0 %vm4076_vm5, %v3510_v32  ;;  %3203 = vmatprep.mubr.msk.f32.mxu0 %vm3835_vm1, %v3834_v2 }
 0x25d   :  { %v1284_v34 = vpop.permute.xlu1 %1283  ;;  %3242 = vmatprep.subr.mxu0 %v3834_v2  ;;  %vm384_vm6 = vcmp.eq.s32.totalorder %v316_v4, %v4185_v5  ;;  %vm385_vm7 = vcmp.eq.s32.totalorder %v323_v11, %v4185_v5  ;;  %vm386_vm9 = vcmp.eq.s32.totalorder %v330_v18, %v4185_v5 }
 0x25e   :  { %v4193_v17 = vsel %vm384_vm6, 1.0, %v3834_v2  ;;  %v4200_v27 = vsel %vm385_vm7, 1.0, %v3834_v2 }
 0x25f   :  { %v1290_v35 = vpop.permute.xlu0 %1289  ;;  %3204 = vmatmul.mubr.msk.f32.gmra.mrb[26].mxu0 %vm414_vm4, %v698_v10 }
 0x260   :  { %3206 = vmatprep.mubr.msk.f32.mxu0 %vm3835_vm1, %v3834_v2 }
 0x261   :  { %v1288_v36 = vpop.permute.xlu1 %1287 }
 0x263   :  { %3207 = vmatmul.mubr.msk.f32.gmra.mrb[28].mxu0 %vm414_vm4, %v700_v9  ;;  %v3654_v40 = vpop.permute.xlu0 %3653 }
 0x264   :  { %3243 = vmatpush3.xpose.msk.msra.mxu0 %vm414_vm4, %v1005_v13  ;;  %3244 = vmatprep.mubr.msk.f32.mxu0 %vm3835_vm1, %v3834_v2  ;;  %v3656_v47 = vunpack.i.h.bf16 %v3654_v40  ;;  %v3655_v48 = vunpack.i.l.bf16 %v3654_v40 }
 0x265   :  { %v3649_v41 = vpop.permute.xlu1 %3648  ;;  %3519 = vmatprep.subr.bf16.mxu0 %v3836_v3 }
 0x266   :  { %v3651_v43 = vunpack.i.h.bf16 %v3649_v41  ;;  %v3650_v45 = vunpack.i.l.bf16 %v3649_v41  ;;  %v3489_v54 = vpack.c.bf16 %v3656_v47, %v3655_v48 }
 0x267   :  { %3245 = vmatmul.mubr.msk.f32.vlgmr.msra.gmra.mrb[30].mxu0 %vm414_vm4, %v987_v15 }
 0x268   :  { %v3486_v49 = vpack.c.bf16 %v3651_v43, %v3650_v45  ;;  %3522 = vmatpush3.bf16.xpose.msk.msra.mxu0 %vm4076_vm5, %v3520_v42  ;;  %3247 = vmatprep.mubr.msk.f32.mxu0 %vm3835_vm1, %v3834_v2 }
 0x269   :  { %3523 = vmatprep.subr.bf16.mxu0 %v3836_v3  ;;  %v4145_v53 = vpop.permute.xlu1 %3663 }
 0x26a   :  { %3487 = vmatpush3.bf16.msra.mxu1 %v3486_v49 }
 0x26b   :  { %3248 = vmatmul.mubr.msk.f32.gmra.mrb[32].mxu0 %vm414_vm4, %v989_v14  ;;  %3488 = vmatprep.subr.bf16.mxu1 %v3836_v3 }
 0x26c   :  { %3250 = vmatprep.mubr.msk.f32.mxu0 %vm3835_vm1, %v3834_v2 }
 0x26d   :  { %v580_v56 = vpop.permute.xlu1 %579 }
 0x26e   :  { %3490 = vmatpush3.bf16.msra.mxu1 %v3489_v54 }
 0x26f   :  { %3251 = vmatmul.mubr.msk.f32.gmra.mrb[34].mxu0 %vm414_vm4, %v991_v20  ;;  %3167 = vmatprep.subr.mxu1 %v3834_v2 }
 0x270   :  { %3526 = vmatpush3.bf16.xpose.msk.msra.mxu0 %vm4076_vm5, %v3524_v55  ;;  %3253 = vmatprep.mubr.msk.f32.mxu0 %vm3835_vm1, %v3834_v2 }
 0x271   :  { %3292 = vmatprep.subr.mxu0 %v3834_v2 }
 0x272   :  { %3168 = vmatpush3.msra.mxu1 %v580_v56 }
 0x273   :  { %3254 = vmatmul.mubr.msk.f32.gmra.mrb[36].mxu0 %vm414_vm4, %v993_v26  ;;  %3499 = vmatprep.subr.bf16.mxu1 %v3836_v3 }
 0x274   :  { %3256 = vmatprep.mubr.msk.f32.mxu0 %vm3835_vm1, %v3834_v2 }
 0x277   :  { %3257 = vmatmul.mubr.msk.f32.gmra.mrb[38].mxu0 %vm414_vm4, %v995_v24 }
 0x278   :  { %3293 = vmatpush3.xpose.msk.msra.mxu0 %vm414_vm4, %v1300_v31  ;;  %3294 = vmatprep.mubr.msk.f32.mxu0 %vm3835_vm1, %v3834_v2 }
 0x279   :  { %3533 = vmatprep.subr.bf16.mxu0 %v3836_v3 }
 0x27b   :  { %3295 = vmatmul.mubr.msk.f32.vlgmr.msra.gmra.mrb[40].mxu0 %vm414_vm4, %v1282_v30  ;;  %v309_v30 = vadd.s32 32, %v4182_v60 }
 0x27c   :  { %3297 = vmatprep.mubr.msk.f32.mxu0 %vm3835_vm1, %v3834_v2 }
 0x27d   :  { %v344_v39 = vand.u32 7, %v309_v30 }
 0x27f   :  { %3298 = vmatmul.mubr.msk.f32.gmra.mrb[42].mxu0 %vm414_vm4, %v1284_v34  ;;  %vm388_vm10 = vcmp.eq.s32.totalorder %v344_v39, %v4185_v5 }
 0x280   :  { %3300 = vmatprep.mubr.msk.f32.mxu0 %vm3835_vm1, %v3834_v2  ;;  %v4221_v54 = vsel %vm388_vm10, 1.0, %v3834_v2 }
 0x283   :  { %3301 = vmatmul.mubr.msk.f32.gmra.mrb[44].mxu0 %vm414_vm4, %v1286_v33 }
 0x284   :  { %3303 = vmatprep.mubr.msk.f32.mxu0 %vm3835_vm1, %v3834_v2 }
 0x287   :  { %3304 = vmatmul.mubr.msk.f32.gmra.mrb[46].mxu0 %vm414_vm4, %v1288_v36  ;;  %v4210_v36 = vsel %vm386_vm9, 1.0, %v3834_v2 }
 0x288   :  { %3306 = vmatprep.mubr.msk.f32.mxu0 %vm3835_vm1, %v3834_v2 }
 0x28b   :  { %3307 = vmatmul.mubr.msk.f32.gmra.mrb[48].mxu0 %vm414_vm4, %v1290_v35 }
 0x28c   :  { %3342 = vmatprep.mubr.msk.f32.mxu0 %vm3835_vm1, %v3834_v2 }
 0x312   :  { %v501_v57 = vpop.f32.mrb[10].mxu0 }
 0x313   :  { %v525_v58 = vmul.f32 0.35355338, %v501_v57  ;;  %v3146_v59 = vpop.f32.mrb[11].mxu0 }
 0x315   :  { %v530_v62 = vmul.f32 1.442695, %v525_v58 }
 0x316   :  { %v506_v63 = vpop.f32.mrb[12].mxu0 }
 0x317   :  { %3690 = vpow2.f32 %v530_v62  ;;  %v526_v0 = vmul.f32 0.35355338, %v506_v63  ;;  %v3149_v1 = vpop.f32.mrb[13].mxu0 }
 0x319   :  { %v532_v7 = vmul.f32 1.442695, %v526_v0 }
 0x31a   :  { %v511_v8 = vpop.f32.mrb[14].mxu0 }
 0x31b   :  { %3692 = vpow2.f32 %v532_v7  ;;  %v527_v9 = vmul.f32 0.35355338, %v511_v8  ;;  %v3152_v10 = vpop.f32.mrb[15].mxu0 }
 0x31d   :  { %v534_v13 = vmul.f32 1.442695, %v527_v9 }
 0x31e   :  { %v4190_v14 = vpop.f32.mrb[16].mxu0 }
 0x31f   :  { %3694 = vpow2.f32 %v534_v13  ;;  %v3155_v15 = vpop.f32.mrb[17].mxu0  ;;  %v528_v13 = vmul.f32 0.35355338, %v4190_v14 }
 0x321   :  { %v3691_v20 = vpop.eup %3690 }
 0x322   :  { %v521_v21 = vpop.f32.mrb[18].mxu0  ;;  %v4197_v23 = vmul.f32 %v3691_v20, %v4193_v17 }
 0x323   :  { %v529_v24 = vmul.f32 0.35355338, %v521_v21  ;;  %v3158_v26 = vpop.f32.mrb[19].mxu0 }
 0x324   :  { %v546_v29 = vsel %vm545_vm8, %v4197_v23, 0.0 }
 0x325   :  { %v3693_v31 = vpop.eup %3692  ;;  %v538_v32 = vmul.f32 1.442695, %v529_v24  ;;  %547 = vadd.xlane.f32.xlu1 %v546_v29  ;;  %v536_v24 = vmul.f32 1.442695, %v528_v13 }
 0x326   :  { %v797_v33 = vpop.f32.mrb[20].mxu0  ;;  %v4207_v34 = vmul.f32 %v3693_v31, %v4200_v27 }
 0x327   :  { %3696 = vpow2.f32 %v538_v32  ;;  %v3196_v35 = vpop.f32.mrb[21].mxu0  ;;  %v821_v26 = vmul.f32 0.35355338, %v797_v33 }
 0x328   :  { %v549_v38 = vsel %vm545_vm8, %v4207_v34, 0.0 }
 0x329   :  { %v3695_v40 = vpop.eup %3694  ;;  %550 = vadd.xlane.f32.xlu0 %v549_v38  ;;  %v308_v38 = vadd.s32 24, %v4182_v60  ;;  %v826_v14 = vmul.f32 1.442695, %v821_v26 }
 0x32a   :  { %v802_v41 = vpop.f32.mrb[22].mxu0  ;;  %v4215_v42 = vmul.f32 %v3695_v40, %v4210_v36 }
 0x32b   :  { %v822_v43 = vmul.f32 0.35355338, %v802_v41  ;;  %v3199_v45 = vpop.f32.mrb[23].mxu0  ;;  %v337_v41 = vand.u32 7, %v308_v38 }
 0x32c   :  { %v552_v47 = vsel %vm545_vm8, %v4215_v42, 0.0 }
 0x32d   :  { %v828_v48 = vmul.f32 1.442695, %v822_v43  ;;  %553 = vadd.xlane.f32.xlu0 %v552_v47  ;;  %vm387_vm11 = vcmp.eq.s32.totalorder %v337_v41, %v4185_v5 }
 0x32e   :  { %v807_v49 = vpop.f32.mrb[24].mxu0 }
 0x32f   :  { %3698 = vpow2.f32 %v828_v48  ;;  %v823_v50 = vmul.f32 0.35355338, %v807_v49  ;;  %v3202_v52 = vpop.f32.mrb[25].mxu0 }
 0x331   :  { %v3697_v55 = vpop.eup %3696  ;;  %v830_v56 = vmul.f32 1.442695, %v823_v50 }
 0x332   :  { %v4223_v51 = vpop.f32.mrb[26].mxu0  ;;  %v4226_v57 = vmul.f32 %v3697_v55, %v4221_v54 }
 0x333   :  { %3700 = vpow2.f32 %v830_v56  ;;  %v3205_v58 = vpop.f32.mrb[27].mxu0 }
 0x334   :  { %v558_v59 = vsel %vm545_vm8, %v4226_v57, 0.0 }
 0x335   :  { %559 = vadd.xlane.f32.xlu0 %v558_v59  ;;  %v4252_v59 = vsel %vm387_vm11, 1.0, %v3834_v2 }
 0x336   :  { %1169 = vrot.lane.b32.xlu1 %v4036_v46, %s3846_s25  ;;  %v817_v61 = vpop.f32.mrb[28].mxu0 }
 0x337   :  { %v825_v62 = vmul.f32 0.35355338, %v817_v61  ;;  %v3208_v63 = vpop.f32.mrb[29].mxu0 }
 0x339   :  { %v3699_v0 = vpop.eup %3698  ;;  %v834_v1 = vmul.f32 1.442695, %v825_v62 }
 0x33a   :  { %v1092_v4 = vpop.f32.mrb[30].mxu0  ;;  %v4233_v6 = vmul.f32 %v3699_v0, %v4200_v27 }
 0x33b   :  { %3702 = vpow2.f32 %v834_v1  ;;  %v3246_v7 = vpop.f32.mrb[31].mxu0  ;;  %v1116_v39 = vmul.f32 0.35355338, %v1092_v4 }
 0x33d   :  { %v3701_v8 = vpop.eup %3700  ;;  %v1121_v43 = vmul.f32 1.442695, %v1116_v39 }
 0x33e   :  { %v1097_v9 = vpop.f32.mrb[32].mxu0  ;;  %v4236_v10 = vmul.f32 %v3701_v8, %v4210_v36 }
 0x33f   :  { %v1117_v11 = vmul.f32 0.35355338, %v1097_v9  ;;  %v3249_v12 = vpop.f32.mrb[33].mxu0  ;;  %v824_v9 = vmul.f32 0.35355338, %v4223_v51 }
 0x341   :  { %v1123_v15 = vmul.f32 1.442695, %v1117_v11 }
 0x342   :  { %v1102_v18 = vpop.f32.mrb[34].mxu0 }
 0x343   :  { %3704 = vpow2.f32 %v1123_v15  ;;  %v1118_v20 = vmul.f32 0.35355338, %v1102_v18  ;;  %v3252_v21 = vpop.f32.mrb[35].mxu0 }
 0x344   :  { %v832_v21 = vmul.f32 1.442695, %v824_v9 }
 0x345   :  { %v3703_v29 = vpop.eup %3702  ;;  %v1125_v30 = vmul.f32 1.442695, %v1118_v20 }
 0x346   :  { %v4239_v31 = vpop.f32.mrb[36].mxu0  ;;  %v4242_v32 = vmul.f32 %v3703_v29, %v4221_v54 }
 0x347   :  { %3706 = vpow2.f32 %v1125_v30  ;;  %v3255_v35 = vpop.f32.mrb[37].mxu0 }
 0x348   :  { %3708 = vpow2.f32 %v536_v24 }
 0x349   :  { %3710 = vpow2.f32 %v826_v14 }
 0x34a   :  { %v1112_v40 = vpop.f32.mrb[38].mxu0  ;;  %3712 = vpow2.f32 %v1121_v43 }
 0x34b   :  { %3678 = vrot.lane.b32.xlu0 %v4025_v37, %s3847_s26  ;;  %v3258_v33 = vpop.f32.mrb[39].mxu0  ;;  %v1120_v45 = vmul.f32 0.35355338, %v1112_v40 }
 0x34d   :  { %v3705_v47 = vpop.eup %3704  ;;  %v1129_v52 = vmul.f32 1.442695, %v1120_v45 }
 0x34e   :  { %v1387_v48 = vpop.f32.mrb[40].mxu0  ;;  %v4248_v49 = vmul.f32 %v3705_v47, %v4200_v27 }
 0x34f   :  { %v1411_v50 = vmul.f32 0.35355338, %v1387_v48  ;;  %v3296_v60 = vpop.f32.mrb[41].mxu0  ;;  %v1119_v48 = vmul.f32 0.35355338, %v4239_v31 }
 0x351   :  { %v3707_v55 = vpop.eup %3706  ;;  %v1416_v56 = vmul.f32 1.442695, %v1411_v50  ;;  %v844_v50 = vsel %vm545_vm8, %v4233_v6, 0.0 }
 0x352   :  { %v3709_v58 = vpop.eup %3708  ;;  %v1392_v37 = vpop.f32.mrb[42].mxu0  ;;  %v4255_v61 = vmul.f32 %v3707_v55, %v4210_v36 }
 0x353   :  { %3714 = vpow2.f32 %v1416_v56  ;;  %v1412_v62 = vmul.f32 0.35355338, %v1392_v37  ;;  %v3299_v63 = vpop.f32.mrb[43].mxu0  ;;  %v4258_v1 = vmul.f32 %v3709_v58, %v4252_v59  ;;  %v3711_v5 = vpop.eup %3710  ;;  %v847_v56 = vsel %vm545_vm8, %v4236_v10, 0.0 }
 0x354   :  { %3716 = vpow2.f32 %v1129_v52  ;;  %v4264_v13 = vmul.f32 %v3711_v5, %v4193_v17  ;;  %v3713_v15 = vpop.eup %3712  ;;  %v1139_v5 = vsel %vm545_vm8, %v4248_v49, 0.0 }
 0x355   :  { %v1418_v0 = vmul.f32 1.442695, %v1412_v62  ;;  %v555_v12 = vsel %vm545_vm8, %v4258_v1, 0.0  ;;  %v4269_v29 = vmul.f32 %v3713_v15, %v4193_v17 }
 0x356   :  { %v1397_v4 = vpop.f32.mrb[44].mxu0  ;;  %v841_v26 = vsel %vm545_vm8, %v4264_v13, 0.0 }
 0x357   :  { %3718 = vpow2.f32 %v1418_v0  ;;  %v1413_v7 = vmul.f32 0.35355338, %v1397_v4  ;;  %v3302_v8 = vpop.f32.mrb[45].mxu0  ;;  %v1136_v33 = vsel %vm545_vm8, %v4269_v29, 0.0  ;;  %v853_v0 = vsel %vm545_vm8, %v4242_v32, 0.0 }
 0x359   :  { %v1420_v11 = vmul.f32 1.442695, %v1413_v7 }
 0x35a   :  { %556 = vadd.xlane.f32.xlu1 %v555_v12  ;;  %v1402_v18 = vpop.f32.mrb[46].mxu0 }
 0x35b   :  { %3720 = vpow2.f32 %v1420_v11  ;;  %v3305_v20 = vpop.f32.mrb[47].mxu0  ;;  %v1414_v37 = vmul.f32 0.35355338, %v1402_v18  ;;  %v3659_v18 = vpop.permute.xlu0 %3658 }
 0x35c   :  { %3722 = vpow2.f32 %v832_v21  ;;  %v875_v21 = vpop.permute.xlu1 %874 }
 0x35d   :  { %v3715_v24 = vpop.eup %3714  ;;  %v1422_v63 = vmul.f32 1.442695, %v1414_v37 }
 0x35e   :  { %v3717_v51 = vpop.eup %3716  ;;  %842 = vadd.xlane.f32.xlu1 %v841_v26  ;;  %v1407_v30 = vpop.f32.mrb[48].mxu0  ;;  %v4272_v35 = vmul.f32 %v3715_v24, %v4193_v17 }
 0x35f   :  { %v1415_v38 = vmul.f32 0.35355338, %v1407_v30  ;;  %v3308_v14 = vpop.f32.mrb[49].mxu0  ;;  %v4277_v41 = vmul.f32 %v3717_v51, %v4221_v54  ;;  %v3669_v20 = vpop.permute.xlu0 %3668  ;;  %v3661_v30 = vunpack.i.h.bf16 %v3659_v18 }
 0x360   :  { %v1431_v11 = vsel %vm545_vm8, %v4272_v35, 0.0 }
 0x361   :  { %v3719_v39 = vpop.eup %3718  ;;  %v1424_v40 = vmul.f32 1.442695, %v1415_v38  ;;  %v1148_v17 = vsel %vm545_vm8, %v4277_v41, 0.0  ;;  %v3660_v38 = vunpack.i.l.bf16 %v3659_v18 }
 0x362   :  { %1137 = vadd.xlane.f32.xlu1 %v1136_v33  ;;  %v4280_v43 = vmul.f32 %v3719_v39, %v4200_v27  ;;  %v1127_v27 = vmul.f32 1.442695, %v1119_v48  ;;  %v3665_v33 = vunpack.i.l.bf16 %v4145_v53 }
 0x363   :  { %3724 = vpow2.f32 %v1424_v40  ;;  %v4328_v24 = vpop.permute.xlu0 %3673  ;;  %v3500_v39 = vpack.c.bf16 %v3661_v30, %v3660_v38  ;;  %v3666_v40 = vunpack.i.h.bf16 %v4145_v53 }
 0x364   :  { %v1434_v60 = vsel %vm545_vm8, %v4280_v43, 0.0  ;;  %3726 = vpow2.f32 %v1127_v27 }
 0x365   :  { %v3721_v45 = vpop.eup %3720  ;;  %3728 = vpow2.f32 %v1422_v63  ;;  %v3503_v48 = vpack.c.bf16 %v3666_v40, %v3665_v33  ;;  %v3671_v63 = vunpack.i.h.bf16 %v3669_v20 }
 0x366   :  { %1149 = vadd.xlane.f32.xlu1 %v1148_v17  ;;  %v4285_v47 = vmul.f32 %v3721_v45, %v4210_v36  ;;  %v3723_v52 = vpop.eup %3722 }
 0x367   :  { %v4297_v58 = vmul.f32 %v3723_v52, %v4252_v59 }
 0x368   :  { %v1437_v36 = vsel %vm545_vm8, %v4285_v47, 0.0 }
 0x369   :  { %v850_v62 = vsel %vm545_vm8, %v4297_v58, 0.0 }
 0x36a   :  { %845 = vadd.xlane.f32.xlu0 %v844_v50  ;;  %1435 = vadd.xlane.f32.xlu1 %v1434_v60 }
 0x36d   :  { %v3725_v55 = vpop.eup %3724 }
 0x36e   :  { %848 = vadd.xlane.f32.xlu0 %v847_v56  ;;  %1438 = vadd.xlane.f32.xlu1 %v1437_v36  ;;  %v4300_v31 = vmul.f32 %v3725_v55, %v4221_v54  ;;  %v3727_v4 = vpop.eup %3726  ;;  %v1142_v54 = vsel %vm545_vm8, %v4255_v61, 0.0 }
 0x36f   :  { %v4311_v7 = vmul.f32 %v3727_v4, %v4252_v59  ;;  %v3729_v9 = vpop.eup %3728 }
 0x370   :  { %v4320_v12 = vmul.f32 %v3729_v9, %v4252_v59  ;;  %v3675_v9 = vunpack.i.l.bf16 %v4328_v24 }
 0x371   :  { %v1145_v8 = vsel %vm545_vm8, %v4311_v7, 0.0 }
 0x372   :  { %851 = vadd.xlane.f32.xlu0 %v850_v62  ;;  %v1440_v15 = vsel %vm545_vm8, %v4320_v12, 0.0 }
 0x376   :  { %854 = vadd.xlane.f32.xlu0 %v853_v0  ;;  %v3670_v0 = vunpack.i.l.bf16 %v3669_v20 }
 0x37a   :  { %1140 = vadd.xlane.f32.xlu0 %v1139_v5 }
 0x37e   :  { %1143 = vadd.xlane.f32.xlu0 %v1142_v54  ;;  %v3514_v54 = vpack.c.bf16 %v3671_v63, %v3670_v0 }
 0x37f   :  { %3683 = vrot.lane.b32.xlu1 %v4034_v44, %s3847_s26  ;;  %v1443_v44 = vsel %vm545_vm8, %v4300_v31, 0.0 }
 0x382   :  { %1146 = vadd.xlane.f32.xlu0 %v1145_v8  ;;  %v3676_v8 = vunpack.i.h.bf16 %v4328_v24 }
 0x386   :  { %1432 = vadd.xlane.f32.xlu0 %v1431_v11 }
 0x38a   :  { %1441 = vadd.xlane.f32.xlu0 %v1440_v15  ;;  %v3517_v15 = vpack.c.bf16 %v3676_v8, %v3675_v9 }
 0x3a0   :  { %1464 = vrot.lane.b32.xlu0 %v4036_v46, %s3847_s26 }
 0x3a3   :  { %1444 = vadd.xlane.f32.xlu1 %v1443_v44 }
 0x3b2   :  { %v548_v26 = vpop.xlane.xlu1 %547 }
 0x3b3   :  { %3730 = vrcp.f32 %v548_v26 }
 0x3b6   :  { %v551_v59 = vpop.xlane.xlu0 %550 }
 0x3b7   :  { %3732 = vrcp.f32 %v551_v59 }
 0x3ba   :  { %v554_v51 = vpop.xlane.xlu0 %553 }
 0x3bb   :  { %3734 = vrcp.f32 %v554_v51 }
 0x3bd   :  { %v3731_v14 = vpop.eup %3730 }
 0x3be   :  { %v566_v46 = vmul.f32 %v3731_v14, %v4197_v23 }
 0x3c0   :  { %3170 = vmatmul.mubr.msk.f32.vlgmr.msra.gmra.mrb[10].mxu1 %vm545_vm8, %v566_v46 }
 0x3c1   :  { %v3733_v45 = vpop.eup %3732  ;;  %3501 = vmatpush3.bf16.msra.mxu1 %v3500_v39  ;;  %3172 = vmatprep.mubr.msk.f32.mxu1 %vm3835_vm1, %v3834_v2 }
 0x3c2   :  { %3502 = vmatprep.subr.bf16.mxu1 %v3836_v3  ;;  %v567_v17 = vmul.f32 %v3733_v45, %v4207_v34  ;;  %v1170_v34 = vpop.permute.xlu1 %1169  ;;  %v560_v50 = vpop.xlane.xlu0 %559 }
 0x3c4   :  { %3173 = vmatmul.mubr.msk.f32.gmra.mrb[12].mxu1 %vm545_vm8, %v567_v17 }
 0x3c5   :  { %v3735_v23 = vpop.eup %3734  ;;  %3504 = vmatpush3.bf16.msra.mxu1 %v3503_v48  ;;  %3175 = vmatprep.mubr.msk.f32.mxu1 %vm3835_vm1, %v3834_v2 }
 0x3c6   :  { %3217 = vmatprep.subr.mxu1 %v3834_v2  ;;  %v568_v53 = vmul.f32 %v3735_v23, %v4215_v42  ;;  %v4347_v55 = vpop.permute.xlu0 %3678 }
 0x3c7   :  { %v3681_v39 = vunpack.i.h.bf16 %v4347_v55  ;;  %v3680_v40 = vunpack.i.l.bf16 %v4347_v55 }
 0x3c8   :  { %3176 = vmatmul.mubr.msk.f32.gmra.mrb[14].mxu1 %vm545_vm8, %v568_v53 }
 0x3c9   :  { %3218 = vmatpush3.msra.mxu1 %v875_v21  ;;  %3178 = vmatprep.mubr.msk.f32.mxu1 %vm3835_vm1, %v3834_v2  ;;  %v3528_v48 = vpack.c.bf16 %v3681_v39, %v3680_v40 }
 0x3ca   :  { %3513 = vmatprep.subr.bf16.mxu1 %v3836_v3 }
 0x3e7   :  { %v557_v60 = vpop.xlane.xlu1 %556 }
 0x3e8   :  { %3736 = vrcp.f32 %v557_v60 }
 0x3e9   :  { %3738 = vrcp.f32 %v560_v50 }
 0x3eb   :  { %v843_v52 = vpop.xlane.xlu1 %842 }
 0x3ec   :  { %3740 = vrcp.f32 %v843_v52 }
 0x3ef   :  { %v1138_v5 = vpop.xlane.xlu1 %1137 }
 0x3f2   :  { %v3737_v27 = vpop.eup %3736 }
 0x3f3   :  { %v569_v42 = vmul.f32 %v3737_v27, %v4258_v1  ;;  %v3739_v56 = vpop.eup %3738 }
 0x3f4   :  { %v570_v37 = vmul.f32 %v3739_v56, %v4226_v57  ;;  %v1150_v57 = vpop.xlane.xlu1 %1149 }
 0x3f5   :  { %3179 = vmatmul.mubr.msk.f32.gmra.mrb[16].mxu1 %vm545_vm8, %v569_v42 }
 0x3f6   :  { %3181 = vmatprep.mubr.msk.f32.mxu1 %vm3835_vm1, %v3834_v2  ;;  %v3741_v62 = vpop.eup %3740 }
 0x3f7   :  { %v846_v36 = vpop.xlane.xlu0 %845  ;;  %v861_v1 = vmul.f32 %v3741_v62, %v4264_v13 }
 0x3f8   :  { %3742 = vrcp.f32 %v846_v36  ;;  %v1436_v20 = vpop.xlane.xlu1 %1435 }
 0x3f9   :  { %3182 = vmatmul.mubr.msk.f32.gmra.mrb[18].mxu1 %vm545_vm8, %v570_v37 }
 0x3fa   :  { %3219 = vmatprep.mubr.msk.f32.mxu1 %vm3835_vm1, %v3834_v2 }
 0x3fb   :  { %v849_v4 = vpop.xlane.xlu0 %848 }
 0x3fc   :  { %3744 = vrcp.f32 %v849_v4 }
 0x3fd   :  { %3220 = vmatmul.mubr.msk.f32.vlgmr.msra.gmra.mrb[20].mxu1 %vm545_vm8, %v861_v1 }
 0x3fe   :  { %3515 = vmatpush3.bf16.msra.mxu1 %v3514_v54  ;;  %3222 = vmatprep.mubr.msk.f32.mxu1 %vm3835_vm1, %v3834_v2 }
 0x3ff   :  { %v852_v11 = vpop.xlane.xlu0 %851  ;;  %3516 = vmatprep.subr.bf16.mxu1 %v3836_v3 }
 0x400   :  { %3746 = vrcp.f32 %v852_v11 }
 0x402   :  { %v3743_v13 = vpop.eup %3742  ;;  %3518 = vmatpush3.bf16.msra.mxu1 %v3517_v15 }
 0x403   :  { %v855_v44 = vpop.xlane.xlu0 %854  ;;  %3267 = vmatprep.subr.mxu1 %v3834_v2  ;;  %v862_v18 = vmul.f32 %v3743_v13, %v4233_v6  ;;  %v1439_v6 = vpop.xlane.xlu1 %1438 }
 0x404   :  { %3748 = vrcp.f32 %v855_v44 }
 0x405   :  { %3223 = vmatmul.mubr.msk.f32.gmra.mrb[22].mxu1 %vm545_vm8, %v862_v18  ;;  %3750 = vrcp.f32 %v1138_v5 }
 0x406   :  { %v3745_v21 = vpop.eup %3744  ;;  %3268 = vmatpush3.msra.mxu1 %v1170_v34  ;;  %3225 = vmatprep.mubr.msk.f32.mxu1 %vm3835_vm1, %v3834_v2 }
 0x407   :  { %v1141_v24 = vpop.xlane.xlu0 %1140  ;;  %v863_v26 = vmul.f32 %v3745_v21, %v4236_v10  ;;  %3527 = vmatprep.subr.bf16.mxu1 %v3836_v3  ;;  %v3684_v33 = vpop.permute.xlu1 %3683 }
 0x408   :  { %3752 = vrcp.f32 %v1141_v24  ;;  %v3686_v23 = vunpack.i.h.bf16 %v3684_v33  ;;  %v3685_v53 = vunpack.i.l.bf16 %v3684_v33  ;;  %v1653_v24 = vld [vmem:[%s4784_s6] sm:$0xff] }
 0x409   :  { %3226 = vmatmul.mubr.msk.f32.gmra.mrb[24].mxu1 %vm545_vm8, %v863_v26  ;;  %v1654_v26 = vld [vmem:[%s4784_s6 + $0x8] sm:$0xff] }
 0x40a   :  { %v3747_v59 = vpop.eup %3746  ;;  %3228 = vmatprep.mubr.msk.f32.mxu1 %vm3835_vm1, %v3834_v2  ;;  %v3531_v60 = vpack.c.bf16 %v3686_v23, %v3685_v53 }
 0x40b   :  { %v1144_v51 = vpop.xlane.xlu0 %1143  ;;  %v864_v30 = vmul.f32 %v3747_v59, %v4297_v58 }
 0x40c   :  { %3754 = vrcp.f32 %v1144_v51 }
 0x40d   :  { %3229 = vmatmul.mubr.msk.f32.gmra.mrb[26].mxu1 %vm545_vm8, %v864_v30  ;;  %v1655_v30 = vld [vmem:[%s4784_s6 + $0x10] sm:$0xff] }
 0x40e   :  { %v3749_v38 = vpop.eup %3748  ;;  %3231 = vmatprep.mubr.msk.f32.mxu1 %vm3835_vm1, %v3834_v2 }
 0x40f   :  { %v1147_v10 = vpop.xlane.xlu0 %1146  ;;  %v865_v14 = vmul.f32 %v3749_v38, %v4242_v32  ;;  %v3751_v46 = vpop.eup %3750  ;;  %v1656_v38 = vld [vmem:[%s4784_s6 + $0x18] sm:$0xff]  ;;  %s3850_s6 = smov 24  }
 0x410   :  { %3756 = vrcp.f32 %v1147_v10  ;;  %v1156_v58 = vmul.f32 %v3751_v46, %v4269_v29 }
 0x411   :  { %3232 = vmatmul.mubr.msk.f32.gmra.mrb[28].mxu1 %vm545_vm8, %v865_v14  ;;  %3758 = vrcp.f32 %v1150_v57  ;;  %v3537_v14 = vpack.c.bf16 %v1656_v38, %v1655_v30 }
 0x412   :  { %3269 = vmatprep.mubr.msk.f32.mxu1 %vm3835_vm1, %v3834_v2  ;;  %v3753_v17 = vpop.eup %3752 }
 0x413   :  { %v1433_v45 = vpop.xlane.xlu0 %1432  ;;  %v1157_v34 = vmul.f32 %v3753_v17, %v4248_v49 }
 0x414   :  { %3760 = vrcp.f32 %v1433_v45 }
 0x415   :  { %3270 = vmatmul.mubr.msk.f32.vlgmr.msra.gmra.mrb[30].mxu1 %vm545_vm8, %v1156_v58  ;;  %3762 = vrcp.f32 %v1436_v20 }
 0x416   :  { %3529 = vmatpush3.bf16.msra.mxu1 %v3528_v48  ;;  %3272 = vmatprep.mubr.msk.f32.mxu1 %vm3835_vm1, %v3834_v2  ;;  %v3755_v50 = vpop.eup %3754  ;;  %3764 = vrcp.f32 %v1439_v6  ;;  %v3534_v6 = vpack.c.bf16 %v1654_v26, %v1653_v24 }
 0x417   :  { %v1442_v32 = vpop.xlane.xlu0 %1441  ;;  %3530 = vmatprep.subr.bf16.mxu1 %v3836_v3  ;;  %v1158_v52 = vmul.f32 %v3755_v50, %v4255_v61 }
 0x418   :  { %3766 = vrcp.f32 %v1442_v32  ;;  %3535 = vmatpush3.bf16.msra.mxu0 %v3534_v6 }
 0x419   :  { %3273 = vmatmul.mubr.msk.f32.gmra.mrb[32].mxu1 %vm545_vm8, %v1157_v34  ;;  %3536 = vmatprep.subr.bf16.mxu0 %v3836_v3 }
 0x41a   :  { %3532 = vmatpush3.bf16.msra.mxu1 %v3531_v60  ;;  %3275 = vmatprep.mubr.msk.f32.mxu1 %vm3835_vm1, %v3834_v2  ;;  %v3757_v27 = vpop.eup %3756 }
 0x41b   :  { %v1465_v29 = vpop.permute.xlu0 %1464  ;;  %3317 = vmatprep.subr.mxu1 %v3834_v2  ;;  %v1159_v49 = vmul.f32 %v3757_v27, %v4311_v7  ;;  %v3759_v55 = vpop.eup %3758 }
 0x41c   :  { %v1160_v61 = vmul.f32 %v3759_v55, %v4277_v41  ;;  %3538 = vmatpush3.bf16.msra.mxu0 %v3537_v14 }
 0x41d   :  { %3276 = vmatmul.mubr.msk.f32.gmra.mrb[34].mxu1 %vm545_vm8, %v1158_v52  ;;  %3545 = vmatprep.subr.bf16.mxu0 %v3836_v3 }
 0x41e   :  { %3318 = vmatpush3.msra.mxu1 %v1465_v29  ;;  %3278 = vmatprep.mubr.msk.f32.mxu1 %vm3835_vm1, %v3834_v2  ;;  %v3761_v42 = vpop.eup %3760 }
 0x41f   :  { %3539 = vmatprep.subr.bf16.mxu1 %v3836_v3  ;;  %v1451_v7 = vmul.f32 %v3761_v42, %v4272_v35  ;;  %v3763_v56 = vpop.eup %3762 }
 0x420   :  { %v1452_v36 = vmul.f32 %v3763_v56, %v4280_v43  ;;  %v3765_v37 = vpop.eup %3764 }
 0x421   :  { %3279 = vmatmul.mubr.msk.f32.gmra.mrb[36].mxu1 %vm545_vm8, %v1159_v49  ;;  %v1453_v41 = vmul.f32 %v3765_v37, %v4285_v47 }
 0x422   :  { %3281 = vmatprep.mubr.msk.f32.mxu1 %vm3835_vm1, %v3834_v2  ;;  %v3767_v62 = vpop.eup %3766 }
 0x423   :  { %v1454_v35 = vmul.f32 %v3767_v62, %v4320_v12 }
 0x425   :  { %3282 = vmatmul.mubr.msk.f32.gmra.mrb[38].mxu1 %vm545_vm8, %v1160_v61 }
 0x426   :  { %3319 = vmatprep.mubr.msk.f32.mxu1 %vm3835_vm1, %v3834_v2 }
 0x429   :  { %3320 = vmatmul.mubr.msk.f32.vlgmr.msra.gmra.mrb[40].mxu1 %vm545_vm8, %v1451_v7 }
 0x42a   :  { %3322 = vmatprep.mubr.msk.f32.mxu1 %vm3835_vm1, %v3834_v2 }
 0x42d   :  { %3323 = vmatmul.mubr.msk.f32.gmra.mrb[42].mxu1 %vm545_vm8, %v1452_v36 }
 0x42e   :  { %3325 = vmatprep.mubr.msk.f32.mxu1 %vm3835_vm1, %v3834_v2 }
 0x430   :  { %v1445_v63 = vpop.xlane.xlu1 %1444 }
 0x431   :  { %3768 = vrcp.f32 %v1445_v63  ;;  %3326 = vmatmul.mubr.msk.f32.gmra.mrb[44].mxu1 %vm545_vm8, %v1453_v41 }
 0x432   :  { %3328 = vmatprep.mubr.msk.f32.mxu1 %vm3835_vm1, %v3834_v2 }
 0x435   :  { %3329 = vmatmul.mubr.msk.f32.gmra.mrb[46].mxu1 %vm545_vm8, %v1454_v35 }
 0x436   :  { %3331 = vmatprep.mubr.msk.f32.mxu1 %vm3835_vm1, %v3834_v2 }
 0x43b   :  { %v3769_v43 = vpop.eup %3768 }
 0x43c   :  { %v1455_v0 = vmul.f32 %v3769_v43, %v4300_v31 }
 0x43e   :  { %3332 = vmatmul.mubr.msk.f32.gmra.mrb[48].mxu1 %vm545_vm8, %v1455_v0 }
 0x43f   :  { %3365 = vmatprep.mubr.msk.f32.mxu1 %vm3835_vm1, %v3834_v2 }
 0x493   :  { %v4427_v47 = vpop.f32.mrb[10].mxu1 }
 0x494   :  { %v3171_v5 = vpop.f32.mrb[11].mxu1 }
 0x497   :  { %v4429_v1 = vpop.f32.mrb[12].mxu1 }
 0x498   :  { %v3174_v4 = vpop.f32.mrb[13].mxu1 }
 0x49b   :  { %v4431_v12 = vpop.f32.mrb[14].mxu1 }
 0x49c   :  { %v3177_v54 = vpop.f32.mrb[15].mxu1 }
 0x4c8   :  { %v4433_v8 = vpop.f32.mrb[16].mxu1 }
 0x4c9   :  { %v3180_v9 = vpop.f32.mrb[17].mxu1 }
 0x4cc   :  { %v4435_v57 = vpop.f32.mrb[18].mxu1 }
 0x4cd   :  { %v3183_v31 = vpop.f32.mrb[19].mxu1 }
 0x4d0   :  { %v962_v11 = vpop.f32.mrb[20].mxu1 }
 0x4d1   :  { %1581 = vrot.lane.b32.xlu0 %v962_v11, %s3848_s27  ;;  %v3221_v15 = vpop.f32.mrb[21].mxu1 }
 0x4d8   :  { %v967_v13 = vpop.f32.mrb[22].mxu1 }
 0x4d9   :  { %1583 = vrot.lane.b32.xlu0 %v967_v13, %s3848_s27  ;;  %v3224_v44 = vpop.f32.mrb[23].mxu1 }
 0x4dc   :  { %v972_v18 = vpop.f32.mrb[24].mxu1 }
 0x4dd   :  { %v3227_v20 = vpop.f32.mrb[25].mxu1 }
 0x4e0   :  { %v977_v21 = vpop.f32.mrb[26].mxu1 }
 0x4e1   :  { %v3230_v59 = vpop.f32.mrb[27].mxu1 }
 0x4e4   :  { %v982_v51 = vpop.f32.mrb[28].mxu1 }
 0x4e5   :  { %v3233_v10 = vpop.f32.mrb[29].mxu1 }
 0x4e8   :  { %v1257_v46 = vpop.f32.mrb[30].mxu1 }
 0x4e9   :  { %1601 = vrot.lane.b32.xlu0 %v1257_v46, %s3849_s18  ;;  %v3271_v39 = vpop.f32.mrb[31].mxu1 }
 0x4ec   :  { %v1262_v40 = vpop.f32.mrb[32].mxu1 }
 0x4ed   :  { %1585 = vrot.lane.b32.xlu0 %v972_v18, %s3848_s27  ;;  %1603 = vrot.lane.b32.xlu1 %v1262_v40, %s3849_s18  ;;  %v3274_v33 = vpop.f32.mrb[33].mxu1 }
 0x4f0   :  { %v1267_v58 = vpop.f32.mrb[34].mxu1 }
 0x4f1   :  { %1587 = vrot.lane.b32.xlu1 %v977_v21, %s3848_s27  ;;  %v3277_v45 = vpop.f32.mrb[35].mxu1 }
 0x4f4   :  { %v1272_v17 = vpop.f32.mrb[36].mxu1 }
 0x4f5   :  { %v3280_v48 = vpop.f32.mrb[37].mxu1 }
 0x4f8   :  { %v1277_v23 = vpop.f32.mrb[38].mxu1 }
 0x4f9   :  { %v3283_v53 = vpop.f32.mrb[39].mxu1 }
 0x4fc   :  { %v1552_v32 = vpop.f32.mrb[40].mxu1 }
 0x4fd   :  { %1621 = vrot.lane.b32.xlu0 %v1552_v32, %s3850_s6  ;;  %v3321_v34 = vpop.f32.mrb[41].mxu1 }
 0x500   :  { %v1557_v50 = vpop.f32.mrb[42].mxu1 }
 0x501   :  { %1623 = vrot.lane.b32.xlu0 %v1557_v50, %s3850_s6  ;;  %v3324_v60 = vpop.f32.mrb[43].mxu1 }
 0x504   :  { %v1562_v29 = vpop.f32.mrb[44].mxu1 }
 0x505   :  { %1605 = vrot.lane.b32.xlu0 %v1267_v58, %s3849_s18  ;;  %v3327_v52 = vpop.f32.mrb[45].mxu1 }
 0x508   :  { %v1567_v27 = vpop.f32.mrb[46].mxu1 }
 0x509   :  { %1607 = vrot.lane.b32.xlu0 %v1272_v17, %s3849_s18  ;;  %1627 = vrot.lane.b32.xlu1 %v1567_v27, %s3850_s6  ;;  %v3330_v49 = vpop.f32.mrb[47].mxu1 }
 0x50d   :  { %1625 = vrot.lane.b32.xlu0 %v1562_v29, %s3850_s6  ;;  %1609 = vrot.lane.b32.xlu1 %v1277_v23, %s3849_s18 }
 0x511   :  { %1589 = vrot.lane.b32.xlu0 %v982_v51, %s3848_s27  ;;  %v1572_v55 = vpop.f32.mrb[48].mxu1 }
 0x512   :  { %v3333_v61 = vpop.f32.mrb[49].mxu1 }
 0x515   :  { %1629 = vrot.lane.b32.xlu0 %v1572_v55, %s3850_s6 }
 0x543   :  { %v1582_v42 = vpop.permute.xlu0 %1581 }
 0x544   :  { %v1636_v37 = vsel %vm414_vm4, %v4427_v47, %v1582_v42 }
 0x54b   :  { %v1584_v7 = vpop.permute.xlu0 %1583 }
 0x54c   :  { %v1637_v43 = vsel %vm414_vm4, %v4429_v1, %v1584_v7 }
 0x55b   :  { %v1602_v56 = vpop.permute.xlu0 %1601 }
 0x55c   :  { %v1642_v41 = vsel %vm1641_vm12, %v1636_v37, %v1602_v56 }
 0x55f   :  { %v1586_v36 = vpop.permute.xlu0 %1585  ;;  %v1604_v63 = vpop.permute.xlu1 %1603 }
 0x560   :  { %v1643_v0 = vsel %vm1641_vm12, %v1637_v43, %v1604_v63  ;;  %v1638_v31 = vsel %vm414_vm4, %v4431_v12, %v1586_v36 }
 0x563   :  { %v1588_v9 = vpop.permute.xlu1 %1587 }
 0x564   :  { %v1639_v15 = vsel %vm414_vm4, %v4433_v8, %v1588_v9 }
 0x56f   :  { %v1622_v62 = vpop.permute.xlu0 %1621 }
 0x570   :  { %v1648_v35 = vsel %vm1647_vm13, %v1642_v41, %v1622_v62 }
 0x571   :  { %3343 = vmatmul.mubr.msk.f32.vlgmr.msra.gmra.mrb[50].mxu0 %vm198_vm3, %v1648_v35 }
 0x572   :  { %3345 = vmatprep.mubr.msk.f32.mxu0 %vm3835_vm1, %v3834_v2 }
 0x573   :  { %v1624_v5 = vpop.permute.xlu0 %1623 }
 0x574   :  { %v1649_v4 = vsel %vm1647_vm13, %v1643_v0, %v1624_v5 }
 0x575   :  { %3346 = vmatmul.mubr.msk.f32.gmra.mrb[52].mxu0 %vm198_vm3, %v1649_v4 }
 0x576   :  { %3348 = vmatprep.mubr.msk.f32.mxu0 %vm3835_vm1, %v3834_v2 }
 0x577   :  { %v1606_v47 = vpop.permute.xlu0 %1605 }
 0x578   :  { %v1644_v1 = vsel %vm1641_vm12, %v1638_v31, %v1606_v47 }
 0x57b   :  { %v1608_v54 = vpop.permute.xlu0 %1607  ;;  %v1628_v13 = vpop.permute.xlu1 %1627 }
 0x57c   :  { %v1645_v18 = vsel %vm1641_vm12, %v1639_v15, %v1608_v54  ;;  %v1861_v15 = vld [vmem:[%s4785_s7] sm:$0xff] }
 0x57d   :  { %v1651_v21 = vsel %vm1647_vm13, %v1645_v18, %v1628_v13  ;;  %v1862_v13 = vld [vmem:[%s4785_s7 + $0x8] sm:$0xff]  ;;  %v1863_v18 = vld [vmem:[%s4785_s7 + $0x10] sm:$0xff] }
 0x57f   :  { %v1626_v11 = vpop.permute.xlu0 %1625  ;;  %v1610_v24 = vpop.permute.xlu1 %1609 }
 0x580   :  { %v1650_v44 = vsel %vm1647_vm13, %v1644_v1, %v1626_v11 }
 0x581   :  { %3349 = vmatmul.mubr.msk.f32.gmra.mrb[54].mxu0 %vm198_vm3, %v1650_v44  ;;  %v3540_v44 = vpack.c.bf16 %v1862_v13, %v1861_v15 }
 0x582   :  { %3351 = vmatprep.mubr.msk.f32.mxu0 %vm3835_vm1, %v3834_v2 }
 0x583   :  { %v1590_v20 = vpop.permute.xlu0 %1589  ;;  %3541 = vmatpush3.bf16.msra.mxu1 %v3540_v44 }
 0x584   :  { %v1640_v12 = vsel %vm414_vm4, %v4435_v57, %v1590_v20  ;;  %v2910_v57 = vld [vmem:[%s4781_s3 + $0x1] ss:$0 sm:$0xff]  ;;  %3542 = vmatprep.subr.bf16.mxu1 %v3836_v3  ;;  %v1864_v20 = vld [vmem:[%s4785_s7 + $0x18] sm:$0xff] }
 0x585   :  { %3352 = vmatmul.mubr.msk.f32.gmra.mrb[56].mxu0 %vm198_vm3, %v1651_v21  ;;  %v1646_v8 = vsel %vm1641_vm12, %v1640_v12, %v1610_v24  ;;  %v3543_v21 = vpack.c.bf16 %v1864_v20, %v1863_v18 }
 0x586   :  { %3354 = vmatprep.mubr.msk.f32.mxu0 %vm3835_vm1, %v3834_v2 }
 0x587   :  { %v1630_v26 = vpop.permute.xlu0 %1629  ;;  %3544 = vmatpush3.bf16.msra.mxu1 %v3543_v21 }
 0x588   :  { %v1652_v59 = vsel %vm1647_vm13, %v1646_v8, %v1630_v26  ;;  %3557 = vmatprep.subr.bf16.mxu1 %v3836_v3 }
 0x589   :  { %3355 = vmatmul.mubr.msk.f32.gmra.mrb[58].mxu0 %vm198_vm3, %v1652_v59 }
 0x58a   :  { %3396 = vmatprep.mubr.msk.f32.mxu0 %vm3835_vm1, %v3834_v2 }
 0x644   :  { %v1744_v6 = vpop.f32.mrb[50].mxu0 }
 0x645   :  { %v1745_v51 = vadd.f32 %v2910_v57, %v1744_v6  ;;  %v3344_v30 = vpop.f32.mrb[51].mxu0 }
 0x647   :  { %v1768_v38 = vadd.f32 %v1745_v51, %v3986_v16  ;;  %v2916_v51 = vld [vmem:[%s4781_s3 + $0x3] ss:$0 sm:$0xff] }
 0x648   :  { %v1749_v10 = vpop.f32.mrb[52].mxu0 }
 0x649   :  { %v1750_v14 = vadd.f32 %v2910_v57, %v1749_v10  ;;  %v3347_v46 = vpop.f32.mrb[53].mxu0  ;;  %v1773_v39 = vsel %vm198_vm3, %v1768_v38, 0.0  ;;  %v2917_v10 = vld [vmem:[%s4781_s3 + $0x4] ss:$0 sm:$0xff] }
 0x64a   :  { %1774 = vadd.xlane.f32.xlu1 %v1773_v39 }
 0x64b   :  { %v1769_v40 = vadd.f32 %v1750_v14, %v3992_v19 }
 0x64d   :  { %v1776_v33 = vsel %vm198_vm3, %v1769_v40, 0.0 }
 0x64e   :  { %1777 = vadd.xlane.f32.xlu0 %v1776_v33 }
 0x654   :  { %v1754_v58 = vpop.f32.mrb[54].mxu0 }
 0x655   :  { %v1755_v45 = vadd.f32 %v2910_v57, %v1754_v58  ;;  %v3350_v17 = vpop.f32.mrb[55].mxu0 }
 0x657   :  { %v1770_v48 = vadd.f32 %v1755_v45, %v3998_v22 }
 0x658   :  { %v1759_v23 = vpop.f32.mrb[56].mxu0 }
 0x659   :  { %v1760_v53 = vadd.f32 %v2910_v57, %v1759_v23  ;;  %v3353_v32 = vpop.f32.mrb[57].mxu0  ;;  %v1779_v16 = vsel %vm198_vm3, %v1770_v48, 0.0 }
 0x65a   :  { %1780 = vadd.xlane.f32.xlu0 %v1779_v16 }
 0x65b   :  { %v1771_v34 = vadd.f32 %v1760_v53, %v4004_v25 }
 0x65c   :  { %v1764_v50 = vpop.f32.mrb[58].mxu0 }
 0x65d   :  { %v1765_v60 = vadd.f32 %v2910_v57, %v1764_v50  ;;  %v3356_v29 = vpop.f32.mrb[59].mxu0  ;;  %v1782_v19 = vsel %vm198_vm3, %v1771_v34, 0.0 }
 0x65e   :  { %1783 = vadd.xlane.f32.xlu1 %v1782_v19 }
 0x65f   :  { %v1772_v52 = vadd.f32 %v1765_v60, %v4010_v28 }
 0x661   :  { %v1785_v27 = vsel %vm198_vm3, %v1772_v52, 0.0 }
 0x662   :  { %1786 = vadd.xlane.f32.xlu0 %v1785_v27 }
 0x6d7   :  { %v1775_v22 = vpop.xlane.xlu1 %1774 }
 0x6d8   :  { %v1789_v49 = vmul.f32 0.03125, %v1775_v22 }
 0x6da   :  { %v1794_v55 = vsub.f32 %v1768_v38, %v1789_v49 }
 0x6db   :  { %v1778_v61 = vpop.xlane.xlu0 %1777 }
 0x6dc   :  { %v1790_v42 = vmul.f32 0.03125, %v1778_v61  ;;  %v1799_v7 = vmul.f32 %v1794_v55, %v1794_v55 }
 0x6de   :  { %v1795_v56 = vsub.f32 %v1769_v40, %v1790_v42  ;;  %v1804_v25 = vsel %vm198_vm3, %v1799_v7, 0.0 }
 0x6df   :  { %1805 = vadd.xlane.f32.xlu1 %v1804_v25  ;;  %v2023_v25 = vld [vmem:[%s4787_s9 + $0x8] sm:$0xff] }
 0x6e0   :  { %v1800_v36 = vmul.f32 %v1795_v56, %v1795_v56 }
 0x6e2   :  { %v1807_v37 = vsel %vm198_vm3, %v1800_v36, 0.0 }
 0x6e3   :  { %1808 = vadd.xlane.f32.xlu0 %v1807_v37  ;;  %v2024_v37 = vld [vmem:[%s4787_s9 + $0x10] sm:$0xff] }
 0x6e7   :  { %v1781_v41 = vpop.xlane.xlu0 %1780 }
 0x6e8   :  { %v1791_v62 = vmul.f32 0.03125, %v1781_v41  ;;  %v2025_v41 = vld [vmem:[%s4787_s9 + $0x18] sm:$0xff] }
 0x6ea   :  { %v1796_v28 = vsub.f32 %v1770_v48, %v1791_v62  ;;  %v3549_v62 = vpack.c.bf16 %v2025_v41, %v2024_v37 }
 0x6eb   :  { %v1784_v63 = vpop.xlane.xlu1 %1783 }
 0x6ec   :  { %v1792_v35 = vmul.f32 0.03125, %v1784_v63  ;;  %v1801_v43 = vmul.f32 %v1796_v28, %v1796_v28  ;;  %v2027_v63 = vld [vmem:[%s4787_s9 + $0x28] sm:$0xff] }
 0x6ee   :  { %v1797_v0 = vsub.f32 %v1771_v34, %v1792_v35  ;;  %v1810_v5 = vsel %vm198_vm3, %v1801_v43, 0.0  ;;  %v2028_v43 = vld [vmem:[%s4787_s9 + $0x30] sm:$0xff] }
 0x6ef   :  { %1811 = vadd.xlane.f32.xlu1 %v1810_v5  ;;  %v1787_v4 = vpop.xlane.xlu0 %1786 }
 0x6f0   :  { %v1793_v47 = vmul.f32 0.03125, %v1787_v4  ;;  %v1802_v54 = vmul.f32 %v1797_v0, %v1797_v0  ;;  %v2918_v4 = vld [vmem:[%s4786_s8] ss:$0 sm:$0xff] }
 0x6f2   :  { %v1798_v9 = vsub.f32 %v1772_v52, %v1793_v47  ;;  %v1813_v31 = vsel %vm198_vm3, %v1802_v54, 0.0 }
 0x6f3   :  { %1814 = vadd.xlane.f32.xlu0 %v1813_v31 }
 0x6f4   :  { %v1803_v1 = vmul.f32 %v1798_v9, %v1798_v9 }
 0x6f6   :  { %v1816_v11 = vsel %vm198_vm3, %v1803_v1, 0.0 }
 0x6f7   :  { %1817 = vadd.xlane.f32.xlu1 %v1816_v11 }
 0x76c   :  { %v1806_v12 = vpop.xlane.xlu1 %1805 }
 0x76d   :  { %v1819_v24 = vmul.f32 0.03125, %v1806_v12 }
 0x76f   :  { %v1824_v8 = vadd.f32 1e-05, %v1819_v24 }
 0x770   :  { %v1809_v26 = vpop.xlane.xlu0 %1808 }
 0x771   :  { %3770 = vrsqrt.f32 %v1824_v8  ;;  %v1820_v59 = vmul.f32 0.03125, %v1809_v26 }
 0x773   :  { %v1825_v57 = vadd.f32 1e-05, %v1820_v59 }
 0x775   :  { %3772 = vrsqrt.f32 %v1825_v57 }
 0x77b   :  { %v3771_v6 = vpop.eup %3770 }
 0x77c   :  { %v1834_v30 = vmul.f32 %v3771_v6, %v1794_v55  ;;  %v1812_v38 = vpop.xlane.xlu1 %1811 }
 0x77d   :  { %v1821_v14 = vmul.f32 0.03125, %v1812_v38 }
 0x77e   :  { %v1845_v46 = vmul.f32 %v2916_v51, %v1834_v30 }
 0x77f   :  { %v3773_v39 = vpop.eup %3772  ;;  %v1826_v40 = vadd.f32 1e-05, %v1821_v14 }
 0x780   :  { %v4529_v33 = vadd.f32 %v2917_v10, %v1845_v46  ;;  %v1815_v58 = vpop.xlane.xlu0 %1814  ;;  %v1835_v45 = vmul.f32 %v3773_v39, %v1795_v56  ;;  %v2022_v56 = vld [vmem:[%s4787_s9] sm:$0xff] }
 0x781   :  { %3774 = vrsqrt.f32 %v1826_v40  ;;  %v1822_v17 = vmul.f32 0.03125, %v1815_v58  ;;  %v3546_v36 = vpack.c.bf16 %v2023_v25, %v2022_v56 }
 0x782   :  { %3366 = vmatmul.mubr.msk.f32.vlgmr.msra.gmra.mrb[50].mxu1 %vm198_vm3, %v4529_v33  ;;  %v1846_v48 = vmul.f32 %v2916_v51, %v1835_v45 }
 0x783   :  { %v1827_v23 = vadd.f32 1e-05, %v1822_v17  ;;  %3368 = vmatprep.mubr.msk.f32.mxu1 %vm3835_vm1, %v3834_v2  ;;  %3547 = vmatpush3.bf16.msra.mxu0 %v3546_v36 }
 0x784   :  { %v1818_v53 = vpop.xlane.xlu1 %1817  ;;  %v4535_v32 = vadd.f32 %v2917_v10, %v1846_v48  ;;  %3548 = vmatprep.subr.bf16.mxu0 %v3836_v3 }
 0x785   :  { %3776 = vrsqrt.f32 %v1827_v23  ;;  %v1823_v16 = vmul.f32 0.03125, %v1818_v53 }
 0x786   :  { %3369 = vmatmul.mubr.msk.f32.gmra.mrb[52].mxu1 %vm198_vm3, %v4535_v32 }
 0x787   :  { %v1828_v34 = vadd.f32 1e-05, %v1823_v16  ;;  %3371 = vmatprep.mubr.msk.f32.mxu1 %vm3835_vm1, %v3834_v2  ;;  %3550 = vmatpush3.bf16.msra.mxu0 %v3549_v62 }
 0x788   :  { %3551 = vmatprep.subr.bf16.mxu0 %v3836_v3 }
 0x789   :  { %3778 = vrsqrt.f32 %v1828_v34 }
 0x78b   :  { %v3775_v50 = vpop.eup %3774 }
 0x78c   :  { %v1836_v60 = vmul.f32 %v3775_v50, %v1796_v28  ;;  %v2026_v28 = vld [vmem:[%s4787_s9 + $0x20] sm:$0xff] }
 0x78d   :  { %v3552_v35 = vpack.c.bf16 %v2027_v63, %v2026_v28 }
 0x78e   :  { %v1847_v29 = vmul.f32 %v2916_v51, %v1836_v60 }
 0x78f   :  { %v3777_v19 = vpop.eup %3776  ;;  %3553 = vmatpush3.bf16.msra.mxu0 %v3552_v35 }
 0x790   :  { %v4541_v52 = vadd.f32 %v2917_v10, %v1847_v29  ;;  %v1837_v27 = vmul.f32 %v3777_v19, %v1797_v0  ;;  %3554 = vmatprep.subr.bf16.mxu0 %v3836_v3  ;;  %v2029_v0 = vld [vmem:[%s4787_s9 + $0x38] sm:$0xff] }
 0x791   :  { %v3555_v5 = vpack.c.bf16 %v2029_v0, %v2028_v43 }
 0x792   :  { %3372 = vmatmul.mubr.msk.f32.gmra.mrb[54].mxu1 %vm198_vm3, %v4541_v52  ;;  %v1848_v22 = vmul.f32 %v2916_v51, %v1837_v27 }
 0x793   :  { %v3779_v49 = vpop.eup %3778  ;;  %3374 = vmatprep.mubr.msk.f32.mxu1 %vm3835_vm1, %v3834_v2  ;;  %3556 = vmatpush3.bf16.msra.mxu0 %v3555_v5 }
 0x794   :  { %v4547_v55 = vadd.f32 %v2917_v10, %v1848_v22  ;;  %v1838_v61 = vmul.f32 %v3779_v49, %v1798_v9  ;;  %3569 = vmatprep.subr.bf16.mxu0 %v3836_v3 }
 0x796   :  { %3375 = vmatmul.mubr.msk.f32.gmra.mrb[56].mxu1 %vm198_vm3, %v4547_v55  ;;  %v1849_v42 = vmul.f32 %v2916_v51, %v1838_v61 }
 0x797   :  { %3377 = vmatprep.mubr.msk.f32.mxu1 %vm3835_vm1, %v3834_v2 }
 0x798   :  { %v4553_v7 = vadd.f32 %v2917_v10, %v1849_v42 }
 0x79a   :  { %3378 = vmatmul.mubr.msk.f32.gmra.mrb[58].mxu1 %vm198_vm3, %v4553_v7 }
 0x79b   :  { %3419 = vmatprep.mubr.msk.f32.mxu1 %vm3835_vm1, %v3834_v2 }
 0x855   :  { %v1953_v47 = vpop.f32.mrb[50].mxu1 }
 0x856   :  { %v1954_v54 = vadd.f32 %v2918_v4, %v1953_v47  ;;  %v3367_v9 = vpop.f32.mrb[51].mxu1 }
 0x858   :  { %v1977_v31 = vmul.f32 %v1954_v54, %v1954_v54 }
 0x859   :  { %v1958_v1 = vpop.f32.mrb[52].mxu1 }
 0x85a   :  { %v1982_v11 = vmul.f32 %v1977_v31, %v1954_v54  ;;  %v1959_v15 = vadd.f32 %v2918_v4, %v1958_v1  ;;  %v3370_v13 = vpop.f32.mrb[53].mxu1  ;;  %v2924_v31 = vld [vmem:[%s4781_s3 + $0x2] ss:$0 sm:$0xff] }
 0x85c   :  { %v1987_v44 = vmul.f32 0.044715, %v1982_v11  ;;  %v1978_v18 = vmul.f32 %v1959_v15, %v1959_v15 }
 0x85e   :  { %v1992_v20 = vadd.f32 %v1987_v44, %v1954_v54  ;;  %v1983_v21 = vmul.f32 %v1978_v18, %v1959_v15 }
 0x860   :  { %v1997_v12 = vmul.f32 0.7978846, %v1992_v20  ;;  %v1988_v24 = vmul.f32 0.044715, %v1983_v21 }
 0x862   :  { %3780 = vtanh.f32 %v1997_v12  ;;  %v1993_v8 = vadd.f32 %v1988_v24, %v1959_v15 }
 0x864   :  { %v1998_v26 = vmul.f32 0.7978846, %v1993_v8 }
 0x865   :  { %v1963_v59 = vpop.f32.mrb[54].mxu1 }
 0x866   :  { %3782 = vtanh.f32 %v1998_v26  ;;  %v1964_v57 = vadd.f32 %v2918_v4, %v1963_v59  ;;  %v3373_v6 = vpop.f32.mrb[55].mxu1 }
 0x868   :  { %v1979_v51 = vmul.f32 %v1964_v57, %v1964_v57 }
 0x869   :  { %v1968_v30 = vpop.f32.mrb[56].mxu1 }
 0x86a   :  { %v1984_v38 = vmul.f32 %v1979_v51, %v1964_v57  ;;  %v1969_v10 = vadd.f32 %v2918_v4, %v1968_v30  ;;  %v3376_v14 = vpop.f32.mrb[57].mxu1 }
 0x86c   :  { %v3781_v46 = vpop.eup %3780  ;;  %v1989_v39 = vmul.f32 0.044715, %v1984_v38  ;;  %v1980_v40 = vmul.f32 %v1969_v10, %v1969_v10 }
 0x86d   :  { %v2007_v58 = vadd.f32 1.0, %v3781_v46  ;;  %v1973_v45 = vpop.f32.mrb[58].mxu1 }
 0x86e   :  { %v1994_v17 = vadd.f32 %v1989_v39, %v1964_v57  ;;  %v1985_v48 = vmul.f32 %v1980_v40, %v1969_v10  ;;  %v1974_v23 = vadd.f32 %v2918_v4, %v1973_v45  ;;  %v3379_v53 = vpop.f32.mrb[59].mxu1 }
 0x86f   :  { %v2012_v16 = vmul.f32 0.5, %v2007_v58 }
 0x870   :  { %v3783_v34 = vpop.eup %3782  ;;  %v1999_v50 = vmul.f32 0.7978846, %v1994_v17  ;;  %v1990_v60 = vmul.f32 0.044715, %v1985_v48  ;;  %v1981_v29 = vmul.f32 %v1974_v23, %v1974_v23 }
 0x871   :  { %v2017_v19 = vmul.f32 %v2012_v16, %v1954_v54  ;;  %v2008_v27 = vadd.f32 1.0, %v3783_v34 }
 0x872   :  { %3784 = vtanh.f32 %v1999_v50  ;;  %v1995_v22 = vadd.f32 %v1990_v60, %v1969_v10  ;;  %v1986_v49 = vmul.f32 %v1981_v29, %v1974_v23 }
 0x873   :  { %3397 = vmatmul.mubr.msk.f32.vlgmr.msra.gmra.mrb[60].mxu0 %vm2036_vm14, %v2017_v19  ;;  %v2013_v61 = vmul.f32 0.5, %v2008_v27 }
 0x874   :  { %v2000_v42 = vmul.f32 0.7978846, %v1995_v22  ;;  %v1991_v56 = vmul.f32 0.044715, %v1986_v49  ;;  %3399 = vmatprep.mubr.msk.f32.mxu0 %vm3835_vm1, %v3834_v2 }
 0x875   :  { %v2018_v25 = vmul.f32 %v2013_v61, %v1959_v15 }
 0x876   :  { %3786 = vtanh.f32 %v2000_v42  ;;  %v1996_v36 = vadd.f32 %v1991_v56, %v1974_v23 }
 0x877   :  { %3400 = vmatmul.mubr.msk.f32.gmra.mrb[62].mxu0 %vm2036_vm14, %v2018_v25 }
 0x878   :  { %v2001_v37 = vmul.f32 0.7978846, %v1996_v36  ;;  %3402 = vmatprep.mubr.msk.f32.mxu0 %vm3835_vm1, %v3834_v2 }
 0x87a   :  { %3788 = vtanh.f32 %v2001_v37 }
 0x87c   :  { %v3785_v41 = vpop.eup %3784 }
 0x87d   :  { %v2009_v62 = vadd.f32 1.0, %v3785_v41 }
 0x87f   :  { %v2014_v28 = vmul.f32 0.5, %v2009_v62 }
 0x880   :  { %v3787_v63 = vpop.eup %3786 }
 0x881   :  { %v2019_v35 = vmul.f32 %v2014_v28, %v1964_v57  ;;  %v2010_v43 = vadd.f32 1.0, %v3787_v63 }
 0x883   :  { %3403 = vmatmul.mubr.msk.f32.gmra.mrb[64].mxu0 %vm2036_vm14, %v2019_v35  ;;  %v2015_v0 = vmul.f32 0.5, %v2010_v43 }
 0x884   :  { %v3789_v5 = vpop.eup %3788  ;;  %3405 = vmatprep.mubr.msk.f32.mxu0 %vm3835_vm1, %v3834_v2 }
 0x885   :  { %v2020_v4 = vmul.f32 %v2015_v0, %v1969_v10  ;;  %v2011_v47 = vadd.f32 1.0, %v3789_v5 }
 0x887   :  { %3406 = vmatmul.mubr.msk.f32.gmra.mrb[66].mxu0 %vm2036_vm14, %v2020_v4  ;;  %v2016_v54 = vmul.f32 0.5, %v2011_v47  ;;  %v2930_v4 = vld [vmem:[%s4781_s3 + $0x5] ss:$0 sm:$0xff] }
 0x888   :  { %3408 = vmatprep.mubr.msk.f32.mxu0 %vm3835_vm1, %v3834_v2 }
 0x889   :  { %v2021_v9 = vmul.f32 %v2016_v54, %v1974_v23 }
 0x88b   :  { %3409 = vmatmul.mubr.msk.f32.gmra.mrb[68].mxu0 %vm2036_vm14, %v2021_v9 }
 0x88c   :  { %3441 = vmatprep.mubr.msk.f32.mxu0 %vm3835_vm1, %v3834_v2 }
 0x946   :  { %v2118_v1 = vpop.f32.mrb[60].mxu0 }
 0x947   :  { %v2119_v11 = vadd.f32 %v2924_v31, %v2118_v1  ;;  %v3398_v15 = vpop.f32.mrb[61].mxu0 }
 0x949   :  { %v2142_v13 = vadd.f32 %v2119_v11, %v4529_v33 }
 0x94a   :  { %v2123_v44 = vpop.f32.mrb[62].mxu0 }
 0x94b   :  { %v2124_v18 = vadd.f32 %v2924_v31, %v2123_v44  ;;  %v3401_v20 = vpop.f32.mrb[63].mxu0  ;;  %v2147_v21 = vsel %vm198_vm3, %v2142_v13, 0.0 }
 0x94c   :  { %2148 = vadd.xlane.f32.xlu1 %v2147_v21 }
 0x94d   :  { %v2143_v12 = vadd.f32 %v2124_v18, %v4535_v32 }
 0x94f   :  { %v2150_v24 = vsel %vm198_vm3, %v2143_v12, 0.0 }
 0x950   :  { %2151 = vadd.xlane.f32.xlu0 %v2150_v24 }
 0x956   :  { %v2128_v8 = vpop.f32.mrb[64].mxu0 }
 0x957   :  { %v2129_v26 = vadd.f32 %v2924_v31, %v2128_v8  ;;  %v3404_v59 = vpop.f32.mrb[65].mxu0 }
 0x959   :  { %v2144_v57 = vadd.f32 %v2129_v26, %v4541_v52 }
 0x95a   :  { %v2133_v6 = vpop.f32.mrb[66].mxu0 }
 0x95b   :  { %v2134_v51 = vadd.f32 %v2924_v31, %v2133_v6  ;;  %v3407_v30 = vpop.f32.mrb[67].mxu0  ;;  %v2153_v33 = vsel %vm198_vm3, %v2144_v57, 0.0 }
 0x95c   :  { %2154 = vadd.xlane.f32.xlu0 %v2153_v33 }
 0x95d   :  { %v2145_v38 = vadd.f32 %v2134_v51, %v4547_v55 }
 0x95e   :  { %v2138_v10 = vpop.f32.mrb[68].mxu0 }
 0x95f   :  { %v2139_v14 = vadd.f32 %v2924_v31, %v2138_v10  ;;  %v3410_v46 = vpop.f32.mrb[69].mxu0  ;;  %v2156_v32 = vsel %vm198_vm3, %v2145_v38, 0.0  ;;  %v2931_v31 = vld [vmem:[%s4781_s3 + $0x6] ss:$0 sm:$0xff] }
 0x960   :  { %2157 = vadd.xlane.f32.xlu1 %v2156_v32 }
 0x961   :  { %v2146_v39 = vadd.f32 %v2139_v14, %v4553_v7 }
 0x963   :  { %v2159_v40 = vsel %vm198_vm3, %v2146_v39, 0.0 }
 0x964   :  { %2160 = vadd.xlane.f32.xlu0 %v2159_v40 }
 0x9d9   :  { %v2149_v52 = vpop.xlane.xlu1 %2148 }
 0x9da   :  { %v2162_v58 = vmul.f32 0.03125, %v2149_v52 }
 0x9dc   :  { %v2167_v45 = vsub.f32 %v2142_v13, %v2162_v58 }
 0x9dd   :  { %v2152_v17 = vpop.xlane.xlu0 %2151 }
 0x9de   :  { %v2163_v48 = vmul.f32 0.03125, %v2152_v17  ;;  %v2172_v23 = vmul.f32 %v2167_v45, %v2167_v45 }
 0x9e0   :  { %v2168_v53 = vsub.f32 %v2143_v12, %v2163_v48  ;;  %v2177_v55 = vsel %vm198_vm3, %v2172_v23, 0.0 }
 0x9e1   :  { %2178 = vadd.xlane.f32.xlu0 %v2177_v55 }
 0x9e2   :  { %v2173_v16 = vmul.f32 %v2168_v53, %v2168_v53 }
 0x9e4   :  { %v2180_v34 = vsel %vm198_vm3, %v2173_v16, 0.0 }
 0x9e5   :  { %2181 = vadd.xlane.f32.xlu1 %v2180_v34 }
 0x9e9   :  { %v2155_v50 = vpop.xlane.xlu0 %2154 }
 0x9ea   :  { %v2164_v60 = vmul.f32 0.03125, %v2155_v50 }
 0x9ec   :  { %v2169_v7 = vsub.f32 %v2144_v57, %v2164_v60 }
 0x9ed   :  { %v2158_v29 = vpop.xlane.xlu1 %2157 }
 0x9ee   :  { %v2165_v19 = vmul.f32 0.03125, %v2158_v29  ;;  %v2174_v27 = vmul.f32 %v2169_v7, %v2169_v7 }
 0x9f0   :  { %v2170_v22 = vsub.f32 %v2145_v38, %v2165_v19  ;;  %v2183_v49 = vsel %vm198_vm3, %v2174_v27, 0.0 }
 0x9f1   :  { %2184 = vadd.xlane.f32.xlu1 %v2183_v49  ;;  %v2161_v61 = vpop.xlane.xlu0 %2160 }
 0x9f2   :  { %v2166_v42 = vmul.f32 0.03125, %v2161_v61  ;;  %v2175_v56 = vmul.f32 %v2170_v22, %v2170_v22 }
 0x9f4   :  { %v2171_v25 = vsub.f32 %v2146_v39, %v2166_v42  ;;  %v2186_v36 = vsel %vm198_vm3, %v2175_v56, 0.0 }
 0x9f5   :  { %2187 = vadd.xlane.f32.xlu0 %v2186_v36 }
 0x9f6   :  { %v2176_v37 = vmul.f32 %v2171_v25, %v2171_v25 }
 0x9f8   :  { %v2189_v41 = vsel %vm198_vm3, %v2176_v37, 0.0 }
 0x9f9   :  { %2190 = vadd.xlane.f32.xlu1 %v2189_v41 }
 0xa6e   :  { %v2179_v62 = vpop.xlane.xlu0 %2178 }
 0xa6f   :  { %v2192_v28 = vmul.f32 0.03125, %v2179_v62 }
 0xa71   :  { %v2197_v63 = vadd.f32 1e-05, %v2192_v28 }
 0xa72   :  { %v2182_v35 = vpop.xlane.xlu1 %2181 }
 0xa73   :  { %3790 = vrsqrt.f32 %v2197_v63  ;;  %v2193_v43 = vmul.f32 0.03125, %v2182_v35 }
 0xa75   :  { %v2198_v0 = vadd.f32 1e-05, %v2193_v43 }
 0xa77   :  { %3792 = vrsqrt.f32 %v2198_v0  ;;  %v2325_v0 = vld [vmem:[%s4788_s10 + $0x20] sm:$0xff] }
 0xa7d   :  { %v3791_v5 = vpop.eup %3790 }
 0xa7e   :  { %v2185_v47 = vpop.xlane.xlu1 %2184  ;;  %v2207_v54 = vmul.f32 %v3791_v5, %v2167_v45  ;;  %v2326_v5 = vld [vmem:[%s4788_s10 + $0x28] sm:$0xff] }
 0xa7f   :  { %v2194_v9 = vmul.f32 0.03125, %v2185_v47  ;;  %v2327_v47 = vld [vmem:[%s4788_s10 + $0x30] sm:$0xff] }
 0xa80   :  { %v2218_v1 = vmul.f32 %v2930_v4, %v2207_v54  ;;  %v2328_v54 = vld [vmem:[%s4788_s10 + $0x38] sm:$0xff] }
 0xa81   :  { %v3793_v11 = vpop.eup %3792  ;;  %v2199_v15 = vadd.f32 1e-05, %v2194_v9  ;;  %v3561_v9 = vpack.c.bf16 %v2328_v54, %v2327_v47 }
 0xa82   :  { %v2188_v13 = vpop.xlane.xlu0 %2187  ;;  %v2229_v44 = vadd.f32 %v2931_v31, %v2218_v1  ;;  %v2208_v18 = vmul.f32 %v3793_v11, %v2168_v53  ;;  %v2476_v1 = vld [vmem:[%s4788_s10 + $0x48] sm:$0xff] }
 0xa83   :  { %3794 = vrsqrt.f32 %v2199_v15  ;;  %v2195_v20 = vmul.f32 0.03125, %v2188_v13  ;;  %v2477_v15 = vld [vmem:[%s4788_s10 + $0x50] sm:$0xff]  ;;  %v2478_v13 = vld [vmem:[%s4788_s10 + $0x58] sm:$0xff] }
 0xa84   :  { %v2234_v21 = vsel %vm198_vm3, %v2229_v44, 0.0  ;;  %v2219_v12 = vmul.f32 %v2930_v4, %v2208_v18  ;;  %v2717_v18 = vld [vmem:[%s4779_s1] sm:$0xff] }
 0xa85   :  { %v2200_v24 = vadd.f32 1e-05, %v2195_v20  ;;  %2235 = vadd.xlane.f32.xlu1 %v2234_v21  ;;  %v3851_v20 = vmov 0   ;;  %v3852_v21 = vmov 1  }
 0xa86   :  { %v2191_v8 = vpop.xlane.xlu1 %2190  ;;  %v2230_v26 = vadd.f32 %v2931_v31, %v2219_v12  ;;  %3687 = vset.pattern.permute.xlu0 %v3851_v20  ;;  %3688 = vset.pattern.permute.xlu1 %v3852_v21 }
 0xa87   :  { %3796 = vrsqrt.f32 %v2200_v24  ;;  %v2196_v59 = vmul.f32 0.03125, %v2191_v8 }
 0xa88   :  { %v2237_v57 = vsel %vm198_vm3, %v2230_v26, 0.0 }
 0xa89   :  { %v2201_v6 = vadd.f32 1e-05, %v2196_v59  ;;  %2238 = vadd.xlane.f32.xlu0 %v2237_v57 }
 0xa8b   :  { %3798 = vrsqrt.f32 %v2201_v6 }
 0xa8d   :  { %v3795_v51 = vpop.eup %3794 }
 0xa8e   :  { %v2209_v30 = vmul.f32 %v3795_v51, %v2169_v7 }
 0xa90   :  { %v2220_v33 = vmul.f32 %v2930_v4, %v2209_v30 }
 0xa91   :  { %v3797_v38 = vpop.eup %3796 }
 0xa92   :  { %v2231_v10 = vadd.f32 %v2931_v31, %v2220_v33  ;;  %v2210_v14 = vmul.f32 %v3797_v38, %v2170_v22 }
 0xa94   :  { %v2240_v46 = vsel %vm198_vm3, %v2231_v10, 0.0  ;;  %v2221_v32 = vmul.f32 %v2930_v4, %v2210_v14  ;;  %v2321_v14 = vld [vmem:[%s4788_s10] sm:$0xff] }
 0xa95   :  { %v3799_v39 = vpop.eup %3798  ;;  %2241 = vadd.xlane.f32.xlu0 %v2240_v46  ;;  %v2322_v46 = vld [vmem:[%s4788_s10 + $0x8] sm:$0xff] }
 0xa96   :  { %v2232_v40 = vadd.f32 %v2931_v31, %v2221_v32  ;;  %v2211_v52 = vmul.f32 %v3799_v39, %v2171_v25  ;;  %v2932_v39 = vld [vmem:[%s4781_s3 + $0x7] ss:$0 sm:$0xff] }
 0xa98   :  { %v2243_v58 = vsel %vm198_vm3, %v2232_v40, 0.0  ;;  %v2222_v45 = vmul.f32 %v2930_v4, %v2211_v52  ;;  %v3558_v4 = vpack.c.bf16 %v2326_v5, %v2325_v0  ;;  %v2633_v5 = vld [vmem:[%s4788_s10 + $0x90] sm:$0xff] }
 0xa99   :  { %2244 = vadd.xlane.f32.xlu1 %v2243_v58  ;;  %v2933_v58 = vld [vmem:[%s4781_s3 + $0x8] ss:$0 sm:$0xff] }
 0xa9a   :  { %v2233_v17 = vadd.f32 %v2931_v31, %v2222_v45  ;;  %3559 = vmatpush3.bf16.msra.mxu1 %v3558_v4  ;;  %v2475_v31 = vld [vmem:[%s4788_s10 + $0x40] sm:$0xff]  ;;  %v2634_v4 = vld [vmem:[%s4788_s10 + $0x98] sm:$0xff] }
 0xa9b   :  { %3560 = vmatprep.subr.bf16.mxu1 %v3836_v3  ;;  %v3570_v11 = vpack.c.bf16 %v2476_v1, %v2475_v31 }
 0xa9c   :  { %v2246_v48 = vsel %vm198_vm3, %v2233_v17, 0.0 }
 0xa9d   :  { %2247 = vadd.xlane.f32.xlu0 %v2246_v48  ;;  %3571 = vmatpush3.bf16.msra.mxu0 %v3570_v11 }
 0xa9e   :  { %3562 = vmatpush3.bf16.msra.mxu1 %v3561_v9  ;;  %3572 = vmatprep.subr.bf16.mxu0 %v3836_v3  ;;  %v3585_v9 = vpack.c.bf16 %v2634_v4, %v2633_v5 }
 0xa9f   :  { %3563 = vmatprep.subr.bf16.mxu1 %v3836_v3 }
 0xb12   :  { %v2236_v23 = vpop.xlane.xlu1 %2235 }
 0xb13   :  { %v2249_v53 = vmul.f32 0.03125, %v2236_v23 }
 0xb15   :  { %v4634_v55 = vsub.f32 %v2229_v44, %v2249_v53  ;;  %v3573_v44 = vpack.c.bf16 %v2478_v13, %v2477_v15 }
 0xb16   :  { %v2239_v16 = vpop.xlane.xlu0 %2238 }
 0xb17   :  { %v2250_v34 = vmul.f32 0.03125, %v2239_v16  ;;  %v2259_v50 = vmul.f32 %v4634_v55, %v4634_v55  ;;  %3574 = vmatpush3.bf16.msra.mxu0 %v3573_v44  ;;  %v2323_v16 = vld [vmem:[%s4788_s10 + $0x10] sm:$0xff] }
 0xb18   :  { %3581 = vmatprep.subr.bf16.mxu0 %v3836_v3 }
 0xb19   :  { %v4638_v60 = vsub.f32 %v2230_v26, %v2250_v34  ;;  %v2264_v7 = vsel %vm198_vm3, %v2259_v50, 0.0  ;;  %v2324_v34 = vld [vmem:[%s4788_s10 + $0x18] sm:$0xff] }
 0xb1a   :  { %2265 = vadd.xlane.f32.xlu0 %v2264_v7  ;;  %v3567_v7 = vpack.c.bf16 %v2324_v34, %v2323_v16 }
 0xb1b   :  { %v2260_v29 = vmul.f32 %v4638_v60, %v4638_v60 }
 0xb1d   :  { %v2267_v19 = vsel %vm198_vm3, %v2260_v29, 0.0  ;;  %v2553_v29 = vld [vmem:[%s4788_s10 + $0x60] sm:$0xff] }
 0xb1e   :  { %2268 = vadd.xlane.f32.xlu1 %v2267_v19  ;;  %v2554_v19 = vld [vmem:[%s4788_s10 + $0x68] sm:$0xff] }
 0xb22   :  { %v2242_v27 = vpop.xlane.xlu0 %2241 }
 0xb23   :  { %v2251_v22 = vmul.f32 0.03125, %v2242_v27 }
 0xb25   :  { %v4644_v49 = vsub.f32 %v2231_v10, %v2251_v22  ;;  %v3576_v22 = vpack.c.bf16 %v2554_v19, %v2553_v29 }
 0xb26   :  { %v2245_v61 = vpop.xlane.xlu1 %2244 }
 0xb27   :  { %v2252_v42 = vmul.f32 0.03125, %v2245_v61  ;;  %v2261_v56 = vmul.f32 %v4644_v49, %v4644_v49  ;;  %v2555_v61 = vld [vmem:[%s4788_s10 + $0x70] sm:$0xff] }
 0xb29   :  { %v4648_v25 = vsub.f32 %v2232_v40, %v2252_v42  ;;  %v2270_v36 = vsel %vm198_vm3, %v2261_v56, 0.0 }
 0xb2a   :  { %2271 = vadd.xlane.f32.xlu1 %v2270_v36  ;;  %v2248_v37 = vpop.xlane.xlu0 %2247  ;;  %v2556_v36 = vld [vmem:[%s4788_s10 + $0x78] sm:$0xff] }
 0xb2b   :  { %v2253_v41 = vmul.f32 0.03125, %v2248_v37  ;;  %v2262_v62 = vmul.f32 %v4648_v25, %v4648_v25  ;;  %v2631_v37 = vld [vmem:[%s4788_s10 + $0x80] sm:$0xff] }
 0xb2d   :  { %v4653_v28 = vsub.f32 %v2233_v17, %v2253_v41  ;;  %v2273_v63 = vsel %vm198_vm3, %v2262_v62, 0.0  ;;  %v3564_v17 = vpack.c.bf16 %v2322_v46, %v2321_v14  ;;  %v2632_v41 = vld [vmem:[%s4788_s10 + $0x88] sm:$0xff]  ;;  %v2729_v14 = vld [vmem:[%s4790_s12] sm:$0xff] }
 0xb2e   :  { %2274 = vadd.xlane.f32.xlu0 %v2273_v63 }
 0xb2f   :  { %v2263_v35 = vmul.f32 %v4653_v28, %v4653_v28 }
 0xb31   :  { %v2276_v43 = vsel %vm198_vm3, %v2263_v35, 0.0  ;;  %v3582_v35 = vpack.c.bf16 %v2632_v41, %v2631_v37 }
 0xb32   :  { %2277 = vadd.xlane.f32.xlu1 %v2276_v43 }
 0xb43   :  { %2725 = vperm.xlu1 %3688, %v2717_v18  }
 0xb44   :  { %2720 = vperm.xlu0 %3687, %v2717_v18  }
 0xb47   :  { %3689 = vset.pattern.permute.xlu1 %v3851_v20 }
 0xba7   :  { %v2266_v12 = vpop.xlane.xlu0 %2265 }
 0xba8   :  { %v2279_v24 = vmul.f32 0.03125, %v2266_v12 }
 0xbaa   :  { %v2284_v59 = vadd.f32 1e-05, %v2279_v24 }
 0xbab   :  { %v2269_v8 = vpop.xlane.xlu1 %2268 }
 0xbac   :  { %v2280_v26 = vmul.f32 0.03125, %v2269_v8 }
 0xbae   :  { %v2285_v57 = vadd.f32 1e-05, %v2280_v26 }
 0xbb0   :  { %3800 = vrsqrt.f32 %v2285_v57 }
 0xbb1   :  { %3802 = vrsqrt.f32 %v2284_v59  ;;  %v2939_v59 = vld [vmem:[%s4789_s11] ss:$0 sm:$0xff]  ;;  %s3810_s11 = scalar_lea.vmem %s2817_s30, 128 }
 0xbb2   :  { %p3811_p0 = scmp.ne.s32.totalorder %s2817_s30, %s3810_s11  ;;  %p3816_p2 = scmp.lt.s32.totalorder %s3810_s11, %s3810_s11 }
 0xbb4   :  { %p3817_p3 = por %p3816_p2, %p3815_p1 }
 0xbb6   :  { %p3818_p4 = pnand %p3817_p3, %p3811_p0 }
 0xbb7   :  { %v2272_v6 = vpop.xlane.xlu1 %2271 }
 0xbb8   :  { %v2281_v51 = vmul.f32 0.03125, %v2272_v6 }
 0xbba   :  { %v3801_v30 = vpop.eup %3800  ;;  %v2286_v33 = vadd.f32 1e-05, %v2281_v51 }
 0xbbb   :  { %v2295_v38 = vmul.f32 %v3801_v30, %v4638_v60  ;;  %v2275_v10 = vpop.xlane.xlu0 %2274  ;;  %v3803_v32 = vpop.eup %3802 }
 0xbbc   :  { %3804 = vrsqrt.f32 %v2286_v33  ;;  %v2282_v40 = vmul.f32 0.03125, %v2275_v10  ;;  %v2294_v48 = vmul.f32 %v3803_v32, %v4634_v55 }
 0xbbd   :  { %v2306_v52 = vmul.f32 %v2932_v39, %v2295_v38 }
 0xbbe   :  { %v2287_v45 = vadd.f32 1e-05, %v2282_v40  ;;  %v2305_v55 = vmul.f32 %v2932_v39, %v2294_v48 }
 0xbbf   :  { %v2317_v23 = vadd.f32 %v2933_v58, %v2306_v52  ;;  %v2278_v53 = vpop.xlane.xlu1 %2277 }
 0xbc0   :  { %3806 = vrsqrt.f32 %v2287_v45  ;;  %v2283_v50 = vmul.f32 0.03125, %v2278_v53  ;;  %v2316_v56 = vadd.f32 %v2933_v58, %v2305_v55 }
 0xbc1   :  { %3420 = vmatmul.mubr.msk.f32.vlgmr.msra.gmra.mrb[60].mxu1 %vm198_vm3, %v2317_v23 }
 0xbc2   :  { %v2288_v60 = vadd.f32 1e-05, %v2283_v50  ;;  %3565 = vmatpush3.bf16.msra.mxu1 %v3564_v17  ;;  %3430 = vmatprep.mubr.msk.f32.mxu1 %vm3835_vm1, %v3834_v2 }
 0xbc3   :  { %3566 = vmatprep.subr.bf16.mxu1 %v3836_v3  ;;  %v2721_v51 = vpop.permute.xlu0 %2720  ;;  %v2726_v33 = vpop.permute.xlu1 %2725 }
 0xbc4   :  { %3808 = vrsqrt.f32 %v2288_v60 }
 0xbc6   :  { %v3805_v27 = vpop.eup %3804  ;;  %3568 = vmatpush3.bf16.msra.mxu1 %v3567_v7 }
 0xbc7   :  { %v2296_v42 = vmul.f32 %v3805_v27, %v4644_v49  ;;  %3575 = vmatprep.subr.bf16.mxu1 %v3836_v3  ;;  %v3579_v49 = vpack.c.bf16 %v2556_v36, %v2555_v61 }
 0xbc9   :  { %v2307_v62 = vmul.f32 %v2932_v39, %v2296_v42  ;;  %3431 = vmatmul.mubr.msk.f32.vlgmr.msra.gmra.mrb[62].mxu1 %vm198_vm3, %v2316_v56 }
 0xbca   :  { %v3807_v63 = vpop.eup %3806  ;;  %3577 = vmatpush3.bf16.msra.mxu1 %v3576_v22  ;;  %3452 = vmatprep.mubr.msk.f32.mxu1 %vm3835_vm1, %v3834_v2 }
 0xbcb   :  { %v2318_v43 = vadd.f32 %v2933_v58, %v2307_v62  ;;  %v2297_v0 = vmul.f32 %v3807_v63, %v4648_v25  ;;  %3578 = vmatprep.subr.bf16.mxu1 %v3836_v3 }
 0xbcd   :  { %3442 = vmatmul.mubr.msk.f32.vlgmr.msra.gmra.mrb[70].mxu0 %vm198_vm3, %v2318_v43  ;;  %v2308_v47 = vmul.f32 %v2932_v39, %v2297_v0 }
 0xbce   :  { %v3809_v54 = vpop.eup %3808  ;;  %3580 = vmatpush3.bf16.msra.mxu1 %v3579_v49  ;;  %3583 = vmatpush3.bf16.msra.mxu0 %v3582_v35 }
 0xbcf   :  { %v2298_v31 = vmul.f32 %v3809_v54, %v4653_v28  ;;  %v2319_v25 = vadd.f32 %v2933_v58, %v2308_v47  ;;  %3584 = vmatprep.subr.bf16.mxu0 %v3836_v3  ;;  %3463 = vmatprep.mubr.msk.f32.mxu0 %vm3835_vm1, %v3834_v2  ;;  %v2730_v28 = vld [vmem:[%s4791_s13] sm:$0xff] }
 0xbd0   :  { %3466 = vmatprep.subr.mxu1 %v3834_v2  ;;  %2733 = vperm.xlu1 %3689, %v2730_v28  }
 0xbd1   :  { %3453 = vmatmul.mubr.msk.f32.vlgmr.msra.gmra.mrb[64].mxu1 %vm198_vm3, %v2319_v25  ;;  %v2309_v1 = vmul.f32 %v2932_v39, %v2298_v31 }
 0xbd2   :  { %3586 = vmatpush3.bf16.msra.mxu0 %v3585_v9  ;;  %3468 = vmatprep.mubr.msk.f32.mxu1 %vm3835_vm1, %v3834_v2 }
 0xbd3   :  { %v2320_v11 = vadd.f32 %v2933_v58, %v2309_v1 }
 0xbd5   :  { %3464 = vmatmul.mubr.msk.f32.vlgmr.msra.gmra.mrb[72].mxu0 %vm198_vm3, %v2320_v11 }
 0xc4f   :  { %v2734_v46 = vpop.permute.xlu1 %2733 }
 0xc94   :  { %v2398_v3 = vpop.f32.mrb[60].mxu1 }
 0xc95   :  { %v3421_v15 = vpop.f32.mrb[61].mxu1 }
 0xc9c   :  { %v2471_v13 = vpop.f32.mrb[62].mxu1 }
 0xc9d   :  { %v2472_v44 = vadd.f32 %v2471_v13, %v2398_v3  ;;  %v3432_v18 = vpop.f32.mrb[63].mxu1 }
 0xca0   :  { %v2548_v20 = vpop.f32.mrb[70].mxu0 }
 0xca1   :  { %v2552_v21 = vadd.f32 %v2548_v20, %v2472_v44  ;;  %v3443_v12 = vpop.f32.mrb[71].mxu0 }
 0xca4   :  { %v2626_v24 = vpop.f32.mrb[64].mxu1 }
 0xca5   :  { %v2630_v8 = vadd.f32 %v2626_v24, %v2552_v21  ;;  %v3454_v26 = vpop.f32.mrb[65].mxu1 }
 0xca8   :  { %v2704_v2 = vpop.f32.mrb[72].mxu0 }
 0xca9   :  { %v2708_v57 = vadd.f32 %v2704_v2, %v2630_v8  ;;  %v3465_v6 = vpop.f32.mrb[73].mxu0 }
 0xcab   :  { %v2716_v30 = vadd.f32 %v2939_v59, %v2708_v57 }
 0xcad   :  { %v2723_v38 = vmul.f32 %v2721_v51, %v2716_v30 }
 0xcaf   :  { %v2728_v10 = vadd.f32 %v2726_v33, %v2723_v38 }
 0xcb1   :  { %3467 = vmatpush3.msra.mxu1 %v2728_v10 }
 0xcb2   :  { %3469 = vmatmul.mubr.msk.f32.vlgmr.msra.gmra.mrb[66].mxu1 %vm414_vm4, %v2729_v14 }
 0xd85   :  { %v2805_v32 = vpop.f32.mrb[66].mxu1 }
 0xd86   :  { %v2806_v39 = vadd.f32 %v2805_v32, %v2734_v46  ;;  %v3470_v40 = vpop.f32.mrb[67].mxu1 }
 0xd88   :  { %2809 = vst.msk [vmem:[#allocation2] sm:$0xff] %vm1641_vm12, %v2806_v39 }
 0xd89   :  { %3821 = shalt.err (!%p3818_p4)
}
 0xd8a   :  { %s3822_s16 = scalar_lea.hbm %s4792_s14, 128 }
 0xd8b   :  { %p3823_p5 = scmp.ne.s32.totalorder %s4792_s14, %s3822_s16  ;;  %p3826_p6 = scmp.lt.u32.totalorder %s3822_s16, %s4792_s14 }
 0xd8d   :  { %p3828_p7 = pnand %p3826_p6, %p3823_p5 }
 0xd8f   :  { %3831 = shalt.err (!%p3828_p7)
}
 0xd90   :  { %2819 = dma.vmem_to_hbm [thread:$0]  %s2817_s30, 128, %s4792_s14, [#allocation3]  }
 0xd91   :  { %3832 = dma.done.wait [#allocation3], 128  }
 0xd92   :  { %3833 = vsyncadd [#allocation3], 4294967168 }
 0xd93   :  { %2823 = vsyncpa [#allocation3], 1 }

</bundles_post_ra>
